<compile_context>
chip_gen: v7x
topology: tpu7x:2x2x1
jax: 0.10.0
libtpu: 0.0.40
codegen_flags: <defaults>
</compile_context>

<pallas_src>
import functools

import jax
import jax.numpy as jnp
from jax import lax
from jax.experimental import pallas as pl
from jax.experimental.pallas import tpu as pltpu


def _loss_kernel(x_ref, hr_ref, w_ref, b_ref, out_ref, *, H, W, C):
    x = x_ref[0].astype(jnp.float32)                     # (H, W, C)

    # In-kernel zero halo for the 'same' 3x3 conv (no wrapper pad / extra HBM pass).
    zrow = jnp.zeros((1, W, C), jnp.float32)
    zcol = jnp.zeros((H + 2, 1, C), jnp.float32)
    xp = jnp.concatenate([zrow, x, zrow], axis=0)        # (H+2, W,   C)
    xp = jnp.concatenate([zcol, xp, zcol], axis=1)       # (H+2, W+2, C)

    # Hoist the 3 unique dx shifts once (instead of 9 independent 2-D slices).
    slabs = [xp[:, dx:dx + W, :] for dx in range(3)]     # each (H+2, W, C)

    # im2col operand: tap order = dy*3 + dx, channels contiguous within a tap,
    # matching the (9*C_in, C_out) weight layout built in the wrapper.
    cols = []
    for dy in range(3):
        for dx in range(3):
            cols.append(slabs[dx][dy:dy + H])            # (H, W, C)
    lhs = jnp.concatenate(cols, axis=-1).reshape(H * W, 9 * C)

    # Single fused MXU matmul with K = 9*C (vs 9 serial K=C matmuls before).
    conv = jnp.dot(lhs, w_ref[...], preferred_element_type=jnp.float32)
    conv = conv + b_ref[...]                             # (H*W, C) + (1, C)

    diff = conv - hr_ref[0].reshape(H * W, C).astype(jnp.float32)
    sq = jnp.sum(diff * diff)

    # Per-batch partial sum -> distinct output block per grid step, so the
    # batch axis can be "parallel" (sharded across TensorCores on v7x).
    out_ref[...] = jnp.full((1, 1, 1), sq, jnp.float32)


def loss_init_forward(lr_nchw, hr_nchw, weight_oihw, bias):
    """Pallas implementation of LossInit(Conv2d(C,C,3,p=1), MSELoss())(lr, hr)."""
    N, C, H, W = lr_nchw.shape
    assert hr_nchw.shape == (N, C, H, W)

    # NCHW -> NHWC (channels on the lane axis); NO spatial pre-padding.
    lr_nhwc = jnp.transpose(lr_nchw, (0, 2, 3, 1))
    hr_nhwc = jnp.transpose(hr_nchw, (0, 2, 3, 1))

    # (C_out, C_in, 3, 3) -> (9*C_in, C_out); row index = (dy*3 + dx)*C_in + ci.
    w_mat = jnp.transpose(weight_oihw, (2, 3, 1, 0)).reshape(9 * C, C)
    b_row = bias.reshape(1, C)

    kernel = functools.partial(_loss_kernel, H=H, W=W, C=C)

    # Per-step VMEM: two (1,H,W,C) f32 blocks (~130 KiB each at these shapes,
    # double-buffered) -- far under v7x's 32 MiB scoped VMEM, so full-image
    # blocks are used; the batch grid axis still pipelines DMA vs compute.
    # TODO(synk): add a spatial (row-tile + halo) grid axis for large H*W images.
    partial = pl.pallas_call(
        kernel,
        out_shape=jax.ShapeDtypeStruct((N, 1, 1), jnp.float32),
        grid_spec=pltpu.PrefetchScalarGridSpec(
            num_scalar_prefetch=0,
            grid=(N,),
            in_specs=[
                pl.BlockSpec((1, H, W, C), lambda n: (n, 0, 0, 0)),
                pl.BlockSpec((1, H, W, C), lambda n: (n, 0, 0, 0)),
                pl.BlockSpec((9 * C, C), lambda n: (0, 0)),
                pl.BlockSpec((1, C), lambda n: (0, 0)),
            ],
            out_specs=pl.BlockSpec((1, 1, 1), lambda n: (n, 0, 0)),
        ),
        compiler_params=pltpu.CompilerParams(
            dimension_semantics=("parallel",)),
    )(lr_nhwc, hr_nhwc, w_mat, b_row)

    return jnp.sum(partial) / jnp.float32(N * C * H * W)


def _reference(lr_nchw, hr_nchw, weight_oihw, bias):
    conv = lax.conv_general_dilated(
        lr_nchw, weight_oihw, window_strides=(1, 1), padding="SAME",
        dimension_numbers=("NCHW", "OIHW", "NCHW"))
    conv = conv + bias[None, :, None, None]
    return jnp.mean((conv - hr_nchw) ** 2)


if __name__ == "__main__":
    N, C, H, W = 2, 4, 16, 16
    key = jax.random.PRNGKey(0)
    kw, kb, kx, kh = jax.random.split(key, 4)

    weight = 0.1 * jax.random.normal(kw, (C, C, 3, 3), jnp.float32)  # OIHW
    bias = 0.1 * jax.random.normal(kb, (C,), jnp.float32)
    lr = jax.random.normal(kx, (N, C, H, W), jnp.float32)
    hr = jax.random.normal(kh, (N, C, H, W), jnp.float32)

    loss = loss_init_forward(lr, hr, weight, bias)
    loss = jax.block_until_ready(loss)

    ref = jax.block_until_ready(_reference(lr, hr, weight, bias))
    assert jnp.allclose(loss, ref, rtol=1e-4, atol=1e-5), (loss, ref)

    print("KERNEL_OK")
</pallas_src>

<mosaic_0001>
module attributes {stable_mosaic.version = 11 : i64} {
  func.func @_loss_kernel(%arg0: i32, %arg1: memref<1x16x16x4xf32, #tpu.memory_space<vmem>>, %arg2: memref<1x16x16x4xf32, #tpu.memory_space<vmem>>, %arg3: memref<36x4xf32, #tpu.memory_space<vmem>>, %arg4: memref<1x4xf32, #tpu.memory_space<vmem>>, %arg5: memref<1x1x1xf32, #tpu.memory_space<vmem>>) attributes {dimension_semantics = [#tpu.dimension_semantics<parallel>], iteration_bounds = array<i64: 2>, scalar_prefetch = 0 : i64, scratch_operands = 0 : i64, tpu.core_type = #tpu.core_type<tc>, window_params = [{transform_indices = @transform_0, window_bounds = array<i64: 1, 16, 16, 4>}, {transform_indices = @transform_1, window_bounds = array<i64: 1, 16, 16, 4>}, {pipeline_mode = #tpu.pipeline_mode<synchronous>, transform_indices = @transform_2, window_bounds = array<i64: 36, 4>}, {pipeline_mode = #tpu.pipeline_mode<synchronous>, transform_indices = @transform_3, window_bounds = array<i64: 1, 4>}, {transform_indices = @transform_4, window_bounds = array<i64: 1, 1, 1>}]} {
    %c0 = arith.constant 0 : index
    %c0_0 = arith.constant 0 : index
    %c0_1 = arith.constant 0 : index
    %c0_2 = arith.constant 0 : index
    %0 = vector.load %arg1[%c0, %c0_0, %c0_1, %c0_2] : memref<1x16x16x4xf32, #tpu.memory_space<vmem>>, vector<1x16x16x4xf32>
    %1 = vector.shape_cast %0 : vector<1x16x16x4xf32> to vector<16x16x4xf32>
    %cst = arith.constant 0.000000e+00 : f32
    %2 = vector.broadcast %cst : f32 to vector<1x16x4xf32>
    %cst_3 = arith.constant 0.000000e+00 : f32
    %3 = vector.broadcast %cst_3 : f32 to vector<18x1x4xf32>
    %4 = tpu.concatenate %2, %1, %2 in 0 : vector<1x16x4xf32>, vector<16x16x4xf32>, vector<1x16x4xf32> -> vector<18x16x4xf32>
    %5 = tpu.concatenate %3, %4, %3 in 1 : vector<18x1x4xf32>, vector<18x16x4xf32>, vector<18x1x4xf32> -> vector<18x18x4xf32>
    %6 = vector.extract_strided_slice %5 {offsets = [0, 0, 0], sizes = [18, 16, 4], strides = [1, 1, 1]} : vector<18x18x4xf32> to vector<18x16x4xf32>
    %7 = vector.extract_strided_slice %5 {offsets = [0, 1, 0], sizes = [18, 16, 4], strides = [1, 1, 1]} : vector<18x18x4xf32> to vector<18x16x4xf32>
    %8 = vector.extract_strided_slice %5 {offsets = [0, 2, 0], sizes = [18, 16, 4], strides = [1, 1, 1]} : vector<18x18x4xf32> to vector<18x16x4xf32>
    %9 = vector.extract_strided_slice %6 {offsets = [0, 0, 0], sizes = [16, 16, 4], strides = [1, 1, 1]} : vector<18x16x4xf32> to vector<16x16x4xf32>
    %10 = vector.extract_strided_slice %7 {offsets = [0, 0, 0], sizes = [16, 16, 4], strides = [1, 1, 1]} : vector<18x16x4xf32> to vector<16x16x4xf32>
    %11 = vector.extract_strided_slice %8 {offsets = [0, 0, 0], sizes = [16, 16, 4], strides = [1, 1, 1]} : vector<18x16x4xf32> to vector<16x16x4xf32>
    %12 = vector.extract_strided_slice %6 {offsets = [1, 0, 0], sizes = [16, 16, 4], strides = [1, 1, 1]} : vector<18x16x4xf32> to vector<16x16x4xf32>
    %13 = vector.extract_strided_slice %7 {offsets = [1, 0, 0], sizes = [16, 16, 4], strides = [1, 1, 1]} : vector<18x16x4xf32> to vector<16x16x4xf32>
    %14 = vector.extract_strided_slice %8 {offsets = [1, 0, 0], sizes = [16, 16, 4], strides = [1, 1, 1]} : vector<18x16x4xf32> to vector<16x16x4xf32>
    %15 = vector.extract_strided_slice %6 {offsets = [2, 0, 0], sizes = [16, 16, 4], strides = [1, 1, 1]} : vector<18x16x4xf32> to vector<16x16x4xf32>
    %16 = vector.extract_strided_slice %7 {offsets = [2, 0, 0], sizes = [16, 16, 4], strides = [1, 1, 1]} : vector<18x16x4xf32> to vector<16x16x4xf32>
    %17 = vector.extract_strided_slice %8 {offsets = [2, 0, 0], sizes = [16, 16, 4], strides = [1, 1, 1]} : vector<18x16x4xf32> to vector<16x16x4xf32>
    %18 = tpu.concatenate %9, %10, %11, %12, %13, %14, %15, %16, %17 in 2 : vector<16x16x4xf32>, vector<16x16x4xf32>, vector<16x16x4xf32>, vector<16x16x4xf32>, vector<16x16x4xf32>, vector<16x16x4xf32>, vector<16x16x4xf32>, vector<16x16x4xf32>, vector<16x16x4xf32> -> vector<16x16x36xf32>
    %19 = vector.shape_cast %18 : vector<16x16x36xf32> to vector<256x36xf32>
    %c0_4 = arith.constant 0 : index
    %c0_5 = arith.constant 0 : index
    %20 = vector.load %arg3[%c0_4, %c0_5] : memref<36x4xf32, #tpu.memory_space<vmem>>, vector<36x4xf32>
    %cst_6 = arith.constant dense<0.000000e+00> : vector<256x4xf32>
    %21 = tpu.matmul %19, %20, %cst_6 {dimension_numbers = #tpu.dot_dimension_numbers<[1], [0], [0], [1], [0, 0, 1, 1], [], []>} : vector<256x36xf32>, vector<36x4xf32>, vector<256x4xf32> -> vector<256x4xf32>
    %c0_7 = arith.constant 0 : index
    %c0_8 = arith.constant 0 : index
    %22 = vector.load %arg4[%c0_7, %c0_8] : memref<1x4xf32, #tpu.memory_space<vmem>>, vector<1x4xf32>
    %23 = vector.broadcast %22 : vector<1x4xf32> to vector<256x4xf32>
    %24 = arith.addf %21, %23 : vector<256x4xf32>
    %c0_9 = arith.constant 0 : index
    %c0_10 = arith.constant 0 : index
    %c0_11 = arith.constant 0 : index
    %c0_12 = arith.constant 0 : index
    %25 = vector.load %arg2[%c0_9, %c0_10, %c0_11, %c0_12] : memref<1x16x16x4xf32, #tpu.memory_space<vmem>>, vector<1x16x16x4xf32>
    %26 = vector.shape_cast %25 : vector<1x16x16x4xf32> to vector<16x16x4xf32>
    %27 = vector.shape_cast %26 : vector<16x16x4xf32> to vector<256x4xf32>
    %28 = arith.subf %24, %27 : vector<256x4xf32>
    %29 = arith.mulf %28, %28 : vector<256x4xf32>
    %30 = vector.shape_cast %29 : vector<256x4xf32> to vector<1x256x4xf32>
    %cst_13 = arith.constant dense<0.000000e+00> : vector<1xf32>
    %31 = vector.multi_reduction <add>, %30, %cst_13 [1, 2] : vector<1x256x4xf32> to vector<1xf32>
    %32 = vector.shape_cast %31 : vector<1xf32> to vector<1x1x1xf32>
    %33 = vector.extract %32[0, 0, 0] : f32 from vector<1x1x1xf32>
    %34 = vector.broadcast %33 : f32 to vector<1x1x1xf32>
    %c0_14 = arith.constant 0 : index
    %c0_15 = arith.constant 0 : index
    %c0_16 = arith.constant 0 : index
    %35 = vector.load %arg5[%c0_14, %c0_15, %c0_16] : memref<1x1x1xf32, #tpu.memory_space<vmem>>, vector<1x1x1xf32>
    tpu.vector_store %arg5[%c0_14, %c0_15, %c0_16], %34 {strides = array<i32>} : memref<1x1x1xf32, #tpu.memory_space<vmem>>, vector<1x1x1xf32>,
    return
  }
  func.func @transform_0(%arg0: i32) -> (i32, i32, i32, i32) {
    %c0_i32 = arith.constant 0 : i32
    %c0_i32_0 = arith.constant 0 : i32
    %c0_i32_1 = arith.constant 0 : i32
    %c0_i32_2 = arith.constant 0 : i32
    return %arg0, %c0_i32, %c0_i32_0, %c0_i32_1 : i32, i32, i32, i32
  }
  func.func @transform_1(%arg0: i32) -> (i32, i32, i32, i32) {
    %c0_i32 = arith.constant 0 : i32
    %c0_i32_0 = arith.constant 0 : i32
    %c0_i32_1 = arith.constant 0 : i32
    %c0_i32_2 = arith.constant 0 : i32
    return %arg0, %c0_i32, %c0_i32_0, %c0_i32_1 : i32, i32, i32, i32
  }
  func.func @transform_2(%arg0: i32) -> (i32, i32) {
    %c0_i32 = arith.constant 0 : i32
    %c0_i32_0 = arith.constant 0 : i32
    %c0_i32_1 = arith.constant 0 : i32
    return %c0_i32, %c0_i32_0 : i32, i32
  }
  func.func @transform_3(%arg0: i32) -> (i32, i32) {
    %c0_i32 = arith.constant 0 : i32
    %c0_i32_0 = arith.constant 0 : i32
    %c0_i32_1 = arith.constant 0 : i32
    return %c0_i32, %c0_i32_0 : i32, i32
  }
  func.func @transform_4(%arg0: i32) -> (i32, i32, i32) {
    %c0_i32 = arith.constant 0 : i32
    %c0_i32_0 = arith.constant 0 : i32
    %c0_i32_1 = arith.constant 0 : i32
    return %arg0, %c0_i32, %c0_i32_0 : i32, i32, i32
  }
}

</mosaic_0001>

<bundles_post_ra>
// kernel: tpu_custom_call.1
= control target key start
LH: loop header
LB: loop body
LE: loop exit
PB: predicated region body
PF: predicated region fallthrough
CT: control target
= control target key end

     0   :  { %s2462_s15 = smov 0   ;;  %s3967_s0 = inlined_call_operand.vmem [shape: f32[2,16,16,4], index: 0, kind: input, shape index: {}]   ;;  %s3968_s1 = inlined_call_operand.vmem [shape: f32[2,16,16,4], index: 1, kind: input, shape index: {}]   ;;  %s3969_s2 = inlined_call_operand.vmem [shape: f32[36,4], index: 2, kind: input, shape index: {}]   ;;  %s3970_s3 = inlined_call_operand.vmem [shape: f32[1,4], index: 3, kind: input, shape index: {}]   ;;  %s3971_s4 = inlined_call_operand.vmem [shape: f32[2,1,1], index: 4, kind: output, shape index: {}]  }
   0x1 LB: > { %s2219_s16 = sadd.s32 4294967295, %s2426_s15   ;;  %p2223_p0 = scmp.ge.s32.totalorder %s2426_s15, 1  ;;  %s2426_s15 = sphi %s2462_s15, %s14_s15  }
   0x2   : > { %p172_p1 = scmp.lt.s32.totalorder %s2426_s15, 3 }
   0x4   : > { %p173_p2 = pnand %p2223_p0, %p172_p1 }
   0x6   : > { %176 = sbr.rel (%p173_p2) target bundleno = 1071 (0x42f), region = 36 }
   0xd   : > { %vm279_vm0 = vcmask 1040384   ;;  %p201_p3 = scmp.lt.s32.totalorder %s2219_s16, 1  ;;  %v2428_v0 = vmov 0.0   ;;  %vm445_vm1 = vcmask 1046528   ;;  %s2429_s21 = smov 4   ;;  %vm622_vm2 = vcmask 1045504  }
   0xe   : > { %v2470_v1 = vrot.slane %v2428_v0, 7  ;;  %s2430_s22 = smov 8   ;;  %s2431_s23 = smov 12   ;;  %vm1760_vm3 = vcmask 1043456   ;;  %vm1387_vm4 = vcmask 31744   ;;  %vm1420_vm5 = vcmask 64512  }
   0xf   : > { %s4020_s16 = smov (!%p201_p3, %s2219_s16), 1  ;;  %s2432_s24 = smov 16   ;;  %vm1453_vm6 = vcmask 97280   ;;  %vm1486_vm7 = vcmask 130048   ;;  %vm1519_vm8 = vcmask 162816   ;;  %vm1552_vm9 = vcmask 195584  }
  0x10   : > { %3979 = vst [vmem:[#allocation2_spill] sm:$0xff] %v2470_v1  ;;  %v2476_v2 = vsel %vm279_vm0, 0.0, %v2470_v1  ;;  %v2480_v3 = vsel %vm279_vm0, %v2470_v1, 0.0  ;;  %v447_v4 = vrot.slane %v2470_v1, 1  ;;  %s2264_s17 = sshll.u32 %s4020_s16, 8  ;;  %s2433_s25 = smov 20  }
  0x11   : > { %3980 = vst [vmem:[#allocation3_spill] sm:$0xff] %v2476_v2  ;;  %v446_v5 = vrot.slane %v2476_v2, 1  ;;  %v449_v6 = vrot.slane %v2480_v3, 1  ;;  %s2491_s20 = scalar_lea.vmem %s3967_s0, %s2264_s17  ;;  %s2434_s8 = smov 24   ;;  %vm1585_vm10 = vcmask 228352   ;;  %vm1618_vm11 = vcmask 261120  }
  0x12   : > { %v214_v9 = vld [vmem:[%s2491_s20] sm:$0xff]  ;;  %v215_v10 = vld [vmem:[%s2491_s20 + $0x8] sm:$0xff]  ;;  %v216_v11 = vld [vmem:[%s2491_s20 + $0x10] sm:$0xff]  ;;  %s2435_s11 = smov 28   ;;  %s2436_s12 = smov 32   ;;  %vm1663_vm12 = vcmask 293888  }
  0x13   : > { %v448_v7 = vsel %vm445_vm1, %v446_v5, %v447_v4  ;;  %v450_v8 = vsel %vm445_vm1, %v447_v4, %v449_v6  ;;  %v282_v13 = vrot.slane %v214_v9, 7  ;;  %v283_v14 = vrot.slane %v215_v10, 7  ;;  %v217_v15 = vld [vmem:[%s2491_s20 + $0x18] sm:$0xff]  ;;  %v218_v16 = vld [vmem:[%s2491_s20 + $0x20] sm:$0xff]  ;;  %v219_v17 = vld [vmem:[%s2491_s20 + $0x28] sm:$0xff]  ;;  %s3478_s18 = scalar_lea.vmem %s3968_s1, %s2264_s17 }
  0x14   : > { %v2498_v12 = vpack.i.bf16 %v450_v8, %v448_v7  ;;  %v285_v18 = vrot.slane %v216_v11, 7  ;;  %v286_v19 = vrot.slane %v217_v15, 7  ;;  %v288_v20 = vrot.slane %v218_v16, 7  ;;  %v220_v22 = vld [vmem:[%s2491_s20 + $0x30] sm:$0xff]  ;;  %v221_v31 = vld [vmem:[%s2491_s20 + $0x38] sm:$0xff]  ;;  %v222_v40 = vld [vmem:[%s2491_s20 + $0x40] sm:$0xff] }
  0x15   : > { %v289_v21 = vrot.slane %v219_v17, 7  ;;  %v2507_v23 = vsel %vm279_vm0, %v282_v13, %v283_v14  ;;  %v2510_v24 = vsel %vm279_vm0, %v283_v14, 0.0  ;;  %v2513_v25 = vsel %vm279_vm0, 0.0, %v282_v13  ;;  %v223_v49 = vld [vmem:[%s2491_s20 + $0x48] sm:$0xff]  ;;  %v224_v50 = vld [vmem:[%s2491_s20 + $0x50] sm:$0xff]  ;;  %v225_v55 = vld [vmem:[%s2491_s20 + $0x58] sm:$0xff] }
  0x16   : > { %3981 = vst [vmem:[#allocation4_spill] sm:$0xff] %v2498_v12  ;;  %2395 = vrot.lane.b32.xlu0 %v2498_v12, %s2429_s21  ;;  %v291_v26 = vrot.slane %v220_v22, 7  ;;  %v452_v27 = vrot.slane %v2507_v23, 1  ;;  %v454_v28 = vrot.slane %v2510_v24, 1  ;;  %v451_v29 = vrot.slane %v2513_v25, 1  ;;  %v226_v4 = vld [vmem:[%s2491_s20 + $0x60] sm:$0xff] }
  0x17   : > { %v2519_v30 = vsel %vm279_vm0, %v285_v18, %v286_v19  ;;  %v2523_v32 = vsel %vm279_vm0, 0.0, %v285_v18  ;;  %v2527_v34 = vsel %vm279_vm0, %v286_v19, 0.0  ;;  %v2530_v35 = vsel %vm279_vm0, %v288_v20, %v289_v21  ;;  %v227_v7 = vld [vmem:[%s2491_s20 + $0x68] sm:$0xff]  ;;  %v228_v19 = vld [vmem:[%s2491_s20 + $0x70] sm:$0xff]  ;;  %v229_v22 = vld [vmem:[%s2491_s20 + $0x78] sm:$0xff] }
  0x18   : > { %v457_v33 = vrot.slane %v2519_v30, 1  ;;  %v2533_v36 = vsel %vm445_vm1, %v452_v27, %v454_v28  ;;  %v2536_v37 = vsel %vm445_vm1, %v451_v29, %v452_v27  ;;  %v456_v38 = vrot.slane %v2523_v32, 1 }
  0x19   : > { %v459_v39 = vrot.slane %v2527_v34, 1  ;;  %532 = vrot.lane.b32.xlu1 %v2533_v36, %s2429_s21  ;;  %v2546_v41 = vsel %vm279_vm0, 0.0, %v288_v20  ;;  %v462_v42 = vrot.slane %v2530_v35, 1  ;;  %v2550_v43 = vsel %vm279_vm0, %v289_v21, 0.0 }
  0x1a   : > { %530 = vrot.lane.b32.xlu0 %v2536_v37, %s2429_s21  ;;  %v292_v44 = vrot.slane %v221_v31, 7  ;;  %v2553_v45 = vsel %vm445_vm1, %v456_v38, %v457_v33  ;;  %v461_v47 = vrot.slane %v2546_v41, 1  ;;  %v464_v48 = vrot.slane %v2550_v43, 1 }
  0x1b   : > { %v2556_v46 = vsel %vm445_vm1, %v457_v33, %v459_v39  ;;  %v2566_v52 = vsel %vm279_vm0, 0.0, %v291_v26  ;;  %v294_v54 = vrot.slane %v222_v40, 7  ;;  %v295_v59 = vrot.slane %v223_v49, 7 }
  0x1c   : > { %v2563_v51 = vsel %vm279_vm0, %v291_v26, %v292_v44  ;;  %v2569_v53 = vsel %vm279_vm0, %v292_v44, 0.0  ;;  %v466_v56 = vrot.slane %v2566_v52, 1  ;;  %v297_v61 = vrot.slane %v224_v50, 7  ;;  %v230_v44 = vld [vmem:[%s2491_s20 + $0x80] sm:$0xff] }
  0x1d   : > { %3982 = vst [vmem:[#allocation5_spill] sm:$0xff] %v2563_v51  ;;  %v467_v57 = vrot.slane %v2563_v51, 1  ;;  %534 = vrot.lane.b32.xlu1 %v2553_v45, %s2429_s21  ;;  %v469_v58 = vrot.slane %v2569_v53, 1  ;;  %v2580_v60 = vsel %vm279_vm0, 0.0, %v294_v54  ;;  %v2583_v62 = vsel %vm445_vm1, %v461_v47, %v462_v42  ;;  %v231_v47 = vld [vmem:[%s2491_s20 + $0x88] sm:$0xff] }
  0x1e   : > { %536 = vrot.lane.b32.xlu0 %v2556_v46, %s2429_s21  ;;  %3983 = vst [vmem:[#allocation6_spill] sm:$0xff] %v2580_v60  ;;  %v2586_v63 = vsel %vm445_vm1, %v462_v42, %v464_v48  ;;  %v298_v0 = vrot.slane %v225_v55, 7  ;;  %v2590_v5 = vsel %vm279_vm0, %v294_v54, %v295_v59  ;;  %v2593_v6 = vsel %vm279_vm0, %v295_v59, 0.0 }
  0x1f   : > { %3984 = vst [vmem:[#allocation7_spill] sm:$0xff] %v2590_v5  ;;  %v2597_v8 = vsel %vm445_vm1, %v466_v56, %v467_v57  ;;  %v471_v9 = vrot.slane %v2580_v60, 1  ;;  %v2605_v10 = vsel %vm445_vm1, %v467_v57, %v469_v58  ;;  %v472_v11 = vrot.slane %v2590_v5, 1 }
  0x20   : > { %v2609_v13 = vsel %vm279_vm0, 0.0, %v297_v61  ;;  %v300_v14 = vrot.slane %v226_v4, 7  ;;  %v474_v15 = vrot.slane %v2593_v6, 1  ;;  %v2613_v16 = vsel %vm279_vm0, %v297_v61, %v298_v0 }
  0x21   : > { %538 = vrot.lane.b32.xlu1 %v2583_v62, %s2429_s21  ;;  %v2616_v17 = vsel %vm279_vm0, %v298_v0, 0.0  ;;  %v301_v18 = vrot.slane %v227_v7, 7  ;;  %v626_v20 = vrot.slane %v2480_v3, 2  ;;  %v476_v21 = vrot.slane %v2609_v13, 1 }
  0x22   : > { %540 = vrot.lane.b32.xlu0 %v2586_v63, %s2429_s21  ;;  %v623_v26 = vrot.slane %v2476_v2, 2  ;;  %v624_v27 = vrot.slane %v2470_v1, 2  ;;  %v2629_v28 = vsel %vm445_vm1, %v471_v9, %v472_v11  ;;  %v477_v3 = vrot.slane %v2613_v16, 1  ;;  %v232_v9 = vld [vmem:[%s2491_s20 + $0x90] sm:$0xff] }
  0x23   : > { %v479_v29 = vrot.slane %v2616_v17, 1  ;;  %v2634_v31 = vsel %vm279_vm0, 0.0, %v300_v14  ;;  %v2637_v33 = vsel %vm445_vm1, %v472_v11, %v474_v15  ;;  %v2640_v38 = vsel %vm279_vm0, %v300_v14, %v301_v18  ;;  %v233_v11 = vld [vmem:[%s2491_s20 + $0x98] sm:$0xff] }
  0x24   : > { %v2643_v39 = vsel %vm279_vm0, %v301_v18, 0.0  ;;  %v303_v40 = vrot.slane %v228_v19, 7  ;;  %v304_v42 = vrot.slane %v229_v22, 7  ;;  %v481_v48 = vrot.slane %v2634_v31, 1 }
  0x25   : > { %542 = vrot.lane.b32.xlu1 %v2597_v8, %s2429_s21  ;;  %v625_v49 = vsel %vm622_vm2, %v623_v26, %v624_v27  ;;  %v627_v50 = vsel %vm622_vm2, %v624_v27, %v626_v20  ;;  %v2655_v54 = vsel %vm445_vm1, %v476_v21, %v477_v3  ;;  %v2658_v55 = vsel %vm445_vm1, %v477_v3, %v479_v29 }
  0x26   : > { %544 = vrot.lane.b32.xlu0 %v2605_v10, %s2429_s21  ;;  %v482_v56 = vrot.slane %v2640_v38, 1  ;;  %v484_v57 = vrot.slane %v2643_v39, 1  ;;  %v2663_v58 = vsel %vm279_vm0, 0.0, %v303_v40  ;;  %v306_v59 = vrot.slane %v230_v44, 7 }
  0x27   : > { %v307_v61 = vrot.slane %v231_v47, 7  ;;  %v2665_v0 = vpack.i.bf16 %v627_v50, %v625_v49  ;;  %v2668_v4 = vsel %vm279_vm0, %v303_v40, %v304_v42  ;;  %v2671_v7 = vsel %vm279_vm0, %v304_v42, 0.0 }
  0x28   : > { %v2680_v14 = vsel %vm445_vm1, %v481_v48, %v482_v56  ;;  %v2683_v15 = vsel %vm445_vm1, %v482_v56, %v484_v57  ;;  %v486_v18 = vrot.slane %v2663_v58, 1  ;;  %v487_v19 = vrot.slane %v2668_v4, 1 }
  0x29   : > { %546 = vrot.lane.b32.xlu1 %v2629_v28, %s2429_s21  ;;  %3985 = vst [vmem:[#allocation8_spill] sm:$0xff] %v2665_v0  ;;  %v489_v20 = vrot.slane %v2671_v7, 1  ;;  %v2689_v21 = vsel %vm279_vm0, %v306_v59, %v307_v61  ;;  %v2692_v22 = vsel %vm279_vm0, 0.0, %v306_v59  ;;  %v2695_v26 = vsel %vm279_vm0, %v307_v61, 0.0 }
  0x2a   : > { %548 = vrot.lane.b32.xlu0 %v2637_v33, %s2429_s21  ;;  %v309_v27 = vrot.slane %v232_v9, 7  ;;  %v310_v3 = vrot.slane %v233_v11, 7  ;;  %v491_v29 = vrot.slane %v2692_v22, 1  ;;  %v492_v40 = vrot.slane %v2689_v21, 1 }
  0x2b   : > { %v2704_v42 = vsel %vm445_vm1, %v486_v18, %v487_v19  ;;  %v2707_v44 = vsel %vm445_vm1, %v487_v19, %v489_v20  ;;  %v494_v47 = vrot.slane %v2695_v26, 1  ;;  %v628_v19 = vrot.slane %v2513_v25, 2 }
  0x2c   : > { %v2711_v48 = vsel %vm279_vm0, %v309_v27, %v310_v3  ;;  %v2714_v49 = vsel %vm279_vm0, 0.0, %v309_v27  ;;  %v2717_v50 = vsel %vm279_vm0, %v310_v3, 0.0  ;;  %v2724_v56 = vsel %vm445_vm1, %v491_v29, %v492_v40 }
  0x2d   : > { %550 = vrot.lane.b32.xlu1 %v2655_v54, %s2429_s21  ;;  %v2727_v57 = vsel %vm445_vm1, %v492_v40, %v494_v47  ;;  %v496_v59 = vrot.slane %v2714_v49, 1  ;;  %v497_v61 = vrot.slane %v2711_v48, 1  ;;  %v499_v9 = vrot.slane %v2717_v50, 1  ;;  %v1651_v40 = vld [vmem:[%s3969_s2] sm:$0xff]  ;;  %v1654_v47 = vld [vmem:[%s3969_s2 + $0x18] sm:$0xff] }
  0x2e   : > { %552 = vrot.lane.b32.xlu0 %v2658_v55, %s2429_s21  ;;  %v629_v20 = vrot.slane %v2507_v23, 2  ;;  %v631_v3 = vrot.slane %v2510_v24, 2  ;;  %vm2158_vm13 = vcmask 0  }
  0x2f   : > { %v2737_v11 = vsel %vm445_vm1, %v496_v59, %v497_v61  ;;  %v2740_v18 = vsel %vm445_vm1, %v497_v61, %v499_v9  ;;  %v1655_v61 = vld [vmem:[%s3969_s2 + $0x20] sm:$0xf]  ;;  %v633_v9 = vrot.slane %v2523_v32, 2 }
  0x30   : > { %v630_v27 = vsel %vm622_vm2, %v628_v19, %v629_v20  ;;  %v632_v29 = vsel %vm622_vm2, %v629_v20, %v631_v3  ;;  %v634_v19 = vrot.slane %v2519_v30, 2 }
  0x31   : > { %554 = vrot.lane.b32.xlu1 %v2680_v14, %s2429_s21 }
  0x32   : > { %556 = vrot.lane.b32.xlu0 %v2683_v15, %s2429_s21  ;;  %v635_v20 = vsel %vm622_vm2, %v633_v9, %v634_v19 }
  0x35   : > { %558 = vrot.lane.b32.xlu1 %v2704_v42, %s2429_s21 }
  0x36   : > { %560 = vrot.lane.b32.xlu0 %v2707_v44, %s2429_s21 }
  0x39   : > { %562 = vrot.lane.b32.xlu1 %v2724_v56, %s2429_s21 }
  0x3a   : > { %564 = vrot.lane.b32.xlu0 %v2727_v57, %s2429_s21 }
  0x3d   : > { %566 = vrot.lane.b32.xlu1 %v2737_v11, %s2429_s21 }
  0x3e   : > { %568 = vrot.lane.b32.xlu0 %v2740_v18, %s2429_s21 }
  0x41   : > { %2400 = vrot.lane.b32.xlu1 %v2665_v0, %s2430_s22 }
  0x42   : > { %800 = vrot.lane.b32.xlu0 %v2513_v25, %s2431_s23 }
  0x45   : > { %802 = vrot.lane.b32.xlu1 %v2507_v23, %s2431_s23 }
  0x46   : > { %902 = vrot.lane.b32.xlu0 %v2536_v37, %s2432_s24  ;;  %v1652_v37 = vld [vmem:[%s3969_s2 + $0x8] sm:$0xff] }
  0x47   : > { %v2361_v24 = vpack.c.bf16 %v1652_v37, %v1651_v40 }
  0x49   : > { %904 = vrot.lane.b32.xlu1 %v2533_v36, %s2432_s24  ;;  %2362 = vmatprep.subr.bf16.mxu0 %v2361_v24  ;;  %v1653_v36 = vld [vmem:[%s3969_s2 + $0x10] sm:$0xff] }
  0x4a   : > { %1003 = vrot.lane.b32.xlu0 %v630_v27, %s2433_s25  ;;  %2369 = vmatprep.subr.bf16.mxu1 %v2361_v24  ;;  %v2365_v59 = vpack.c.bf16 %v1654_v47, %v1653_v36  ;;  %v643_v36 = vrot.slane %v2566_v52, 2  ;;  %v644_v47 = vrot.slane %v2563_v51, 2 }
  0x4b   : > { %2364 = vmatpush3.bf16.msra.mxu0 %v2361_v24  ;;  %2372 = vmatpush3.bf16.msra.mxu1 %v2361_v24 }
  0x4c   : > { %2366 = vmatprep.subr.bf16.mxu0 %v2365_v59  ;;  %2370 = vmatprep.subr.bf16.mxu1 %v2365_v59  ;;  %v645_v9 = vsel %vm622_vm2, %v643_v36, %v644_v47 }
  0x4d   : > { %707 = vrot.lane.b32.xlu1 %v630_v27, %s2430_s22  ;;  %v636_v27 = vrot.slane %v2527_v34, 2  ;;  %v638_v34 = vrot.slane %v2546_v41, 2 }
  0x4e   : > { %1005 = vrot.lane.b32.xlu0 %v632_v29, %s2433_s25 }
  0x4f   : > { %2368 = vmatpush3.bf16.msra.mxu0 %v2365_v59  ;;  %2373 = vmatpush3.bf16.msra.mxu1 %v2365_v59  ;;  %v637_v3 = vsel %vm622_vm2, %v634_v19, %v636_v27  ;;  %v646_v19 = vrot.slane %v2569_v53, 2 }
  0x50   : > { %2311 = vmatprep.subr.msk.mxu0 %vm1760_vm3, %v1655_v61  ;;  %2371 = vmatprep.subr.msk.mxu1 %vm1760_vm3, %v1655_v61 }
  0x51   : > { %1099 = vrot.lane.b32.xlu1 %v2523_v32, %s2434_s8 }
  0x52   : > { %709 = vrot.lane.b32.xlu0 %v632_v29, %s2430_s22  ;;  %v641_v29 = vrot.slane %v2550_v43, 2 }
  0x53   : > { %2312 = vmatpush3.msk.msra.mxu0 %vm1760_vm3, %v1655_v61  ;;  %2374 = vmatpush3.msk.msra.mxu1 %vm1760_vm3, %v1655_v61 }
  0x55   : > { %804 = vrot.lane.b32.xlu1 %v2523_v32, %s2431_s23 }
  0x56   : > { %1101 = vrot.lane.b32.xlu0 %v2519_v30, %s2434_s8 }
  0x59   : > { %1195 = vrot.lane.b32.xlu1 %v2553_v45, %s2435_s11 }
  0x5a   : > { %806 = vrot.lane.b32.xlu0 %v2519_v30, %s2431_s23 }
  0x5d   : > { %906 = vrot.lane.b32.xlu1 %v2553_v45, %s2432_s24  ;;  %v639_v45 = vrot.slane %v2530_v35, 2 }
  0x5e   : > { %1197 = vrot.lane.b32.xlu0 %v2556_v46, %s2435_s11 }
  0x5f   : > { %v642_v40 = vsel %vm622_vm2, %v639_v45, %v641_v29 }
  0x61   : > { %1291 = vrot.lane.b32.xlu1 %v635_v20, %s2436_s12 }
  0x62   : > { %908 = vrot.lane.b32.xlu0 %v2556_v46, %s2432_s24  ;;  %v640_v46 = vsel %vm622_vm2, %v638_v34, %v639_v45 }
  0x65   : > { %1007 = vrot.lane.b32.xlu1 %v635_v20, %s2433_s25 }
  0x66   : > { %1293 = vrot.lane.b32.xlu0 %v637_v3, %s2436_s12 }
  0x69   : > { %711 = vrot.lane.b32.xlu1 %v635_v20, %s2430_s22 }
  0x6a   : > { %1009 = vrot.lane.b32.xlu0 %v637_v3, %s2433_s25 }
  0x6d   : > { %1103 = vrot.lane.b32.xlu1 %v2546_v41, %s2434_s8 }
  0x6e   : > { %713 = vrot.lane.b32.xlu0 %v637_v3, %s2430_s22  ;;  %v647_v3 = vsel %vm622_vm2, %v644_v47, %v646_v19  ;;  %v649_v19 = vrot.slane %v2590_v5, 2 }
  0x71   : > { %808 = vrot.lane.b32.xlu1 %v2546_v41, %s2431_s23 }
  0x72   : > { %1105 = vrot.lane.b32.xlu0 %v2530_v35, %s2434_s8 }
  0x75   : > { %1199 = vrot.lane.b32.xlu1 %v2583_v62, %s2435_s11 }
  0x76   : > { %810 = vrot.lane.b32.xlu0 %v2530_v35, %s2431_s23 }
  0x79   : > { %910 = vrot.lane.b32.xlu1 %v2583_v62, %s2432_s24 }
  0x7a   : > { %1201 = vrot.lane.b32.xlu0 %v2586_v63, %s2435_s11 }
  0x7d   : > { %1295 = vrot.lane.b32.xlu1 %v640_v46, %s2436_s12 }
  0x7e   : > { %912 = vrot.lane.b32.xlu0 %v2586_v63, %s2432_s24 }
  0x81   : > { %1011 = vrot.lane.b32.xlu1 %v640_v46, %s2433_s25 }
  0x82   : > { %1297 = vrot.lane.b32.xlu0 %v642_v40, %s2436_s12 }
  0x85   : > { %715 = vrot.lane.b32.xlu1 %v640_v46, %s2430_s22 }
  0x86   : > { %1013 = vrot.lane.b32.xlu0 %v642_v40, %s2433_s25 }
  0x88   : > { %v2833_v62 = vpop.permute.xlu0 %2395 }
  0x89   : > { %1107 = vrot.lane.b32.xlu1 %v2566_v52, %s2434_s8 }
  0x8a   : > { %717 = vrot.lane.b32.xlu0 %v642_v40, %s2430_s22 }
  0x8b   : > { %v2838_v43 = vpop.permute.xlu1 %532 }
  0x8c   : > { %v2840_v63 = vpop.permute.xlu0 %530 }
  0x8d   : > { %812 = vrot.lane.b32.xlu1 %v2566_v52, %s2431_s23 }
  0x8e   : > { %1109 = vrot.lane.b32.xlu0 %v2563_v51, %s2434_s8 }
  0x8f   : > { %v2846_v37 = vpop.permute.xlu1 %534 }
  0x90   : > { %v2848_v24 = vpop.permute.xlu0 %536 }
  0x91   : > { %1203 = vrot.lane.b32.xlu1 %v2597_v8, %s2435_s11 }
  0x92   : > { %814 = vrot.lane.b32.xlu0 %v2563_v51, %s2431_s23 }
  0x93   : > { %v2856_v59 = vpop.permute.xlu1 %538 }
  0x94   : > { %v2858_v61 = vpop.permute.xlu0 %540 }
  0x95   : > { %914 = vrot.lane.b32.xlu1 %v2597_v8, %s2432_s24 }
  0x96   : > { %1205 = vrot.lane.b32.xlu0 %v2605_v10, %s2435_s11 }
  0x97   : > { %v2866_v20 = vpop.permute.xlu1 %542 }
  0x98   : > { %v2868_v27 = vpop.permute.xlu0 %544 }
  0x99   : > { %3986 = vst [vmem:[#allocation9_spill] sm:$0xff] %v2868_v27  ;;  %1299 = vrot.lane.b32.xlu1 %v645_v9, %s2436_s12 }
  0x9a   : > { %916 = vrot.lane.b32.xlu0 %v2605_v10, %s2432_s24 }
  0x9b   : > { %v2874_v34 = vpop.permute.xlu1 %546 }
  0x9c   : > { %3987 = vst [vmem:[#allocation10_spill] sm:$0xff] %v2874_v34  ;;  %v2876_v8 = vpop.permute.xlu0 %548 }
  0x9d   : > { %3988 = vst [vmem:[#allocation11_spill] sm:$0xff] %v2876_v8  ;;  %1015 = vrot.lane.b32.xlu1 %v645_v9, %s2433_s25  ;;  %v654_v8 = vrot.slane %v2613_v16, 2 }
  0x9e   : > { %1301 = vrot.lane.b32.xlu0 %v647_v3, %s2436_s12 }
  0x9f   : > { %v2880_v53 = vpop.permute.xlu1 %550 }
  0xa0   : > { %3989 = vst [vmem:[#allocation12_spill] sm:$0xff] %v2880_v53  ;;  %v2882_v45 = vpop.permute.xlu0 %552 }
  0xa1   : > { %3990 = vst [vmem:[#allocation13_spill] sm:$0xff] %v2882_v45  ;;  %719 = vrot.lane.b32.xlu1 %v645_v9, %s2430_s22  ;;  %v648_v9 = vrot.slane %v2580_v60, 2 }
  0xa2   : > { %1017 = vrot.lane.b32.xlu0 %v647_v3, %s2433_s25 }
  0xa3   : > { %v2886_v46 = vpop.permute.xlu1 %554  ;;  %v650_v12 = vsel %vm622_vm2, %v648_v9, %v649_v19 }
  0xa4   : > { %3991 = vst [vmem:[#allocation14_spill] sm:$0xff] %v2886_v46  ;;  %v2888_v10 = vpop.permute.xlu0 %556 }
  0xa5   : > { %3992 = vst [vmem:[#allocation15_spill] sm:$0xff] %v2888_v10  ;;  %1111 = vrot.lane.b32.xlu1 %v2580_v60, %s2434_s8 }
  0xa6   : > { %721 = vrot.lane.b32.xlu0 %v647_v3, %s2430_s22 }
  0xa7   : > { %v2893_v29 = vpop.permute.xlu1 %558 }
  0xa8   : > { %3993 = vst [vmem:[#allocation16_spill] sm:$0xff] %v2893_v29  ;;  %v2895_v40 = vpop.permute.xlu0 %560 }
  0xa9   : > { %3994 = vst [vmem:[#allocation17_spill] sm:$0xff] %v2895_v40  ;;  %816 = vrot.lane.b32.xlu1 %v2580_v60, %s2431_s23  ;;  %v2398_v60 = vunpack.i.h.bf16 %v2833_v62 }
  0xaa   : > { %1113 = vrot.lane.b32.xlu0 %v2590_v5, %s2434_s8 }
  0xab   : > { %v2901_v36 = vpop.permute.xlu1 %562 }
  0xac   : > { %3995 = vst [vmem:[#allocation18_spill] sm:$0xff] %v2901_v36  ;;  %v2903_v47 = vpop.permute.xlu0 %564 }
  0xad   : > { %3996 = vst [vmem:[#allocation19_spill] sm:$0xff] %v2903_v47  ;;  %1207 = vrot.lane.b32.xlu1 %v2629_v28, %s2435_s11  ;;  %v651_v47 = vrot.slane %v2593_v6, 2 }
  0xae   : > { %818 = vrot.lane.b32.xlu0 %v2590_v5, %s2431_s23  ;;  %v653_v5 = vrot.slane %v2609_v13, 2 }
  0xaf   : > { %v2911_v3 = vpop.permute.xlu1 %566 }
  0xb0   : > { %3997 = vst [vmem:[#allocation20_spill] sm:$0xff] %v2911_v3  ;;  %v2913_v0 = vpop.permute.xlu0 %568  ;;  %v652_v3 = vsel %vm622_vm2, %v649_v19, %v651_v47  ;;  %v2397_v19 = vunpack.i.l.bf16 %v2833_v62  ;;  %v1389_v62 = vsel %vm1387_vm4, %v2470_v1, %v2398_v60 }
  0xb1   : > { %3998 = vst [vmem:[#allocation21_spill] sm:$0xff] %v2913_v0  ;;  %918 = vrot.lane.b32.xlu1 %v2629_v28, %s2432_s24 }
  0xb2   : > { %1209 = vrot.lane.b32.xlu0 %v2637_v33, %s2435_s11 }
  0xb3   : > { %v2401_v36 = vpop.permute.xlu1 %2400 }
  0xb4   : > { %v801_v40 = vpop.permute.xlu0 %800  ;;  %v2403_v27 = vunpack.i.h.bf16 %v2401_v36 }
  0xb5   : > { %1303 = vrot.lane.b32.xlu1 %v650_v12, %s2436_s12 }
  0xb6   : > { %920 = vrot.lane.b32.xlu0 %v2637_v33, %s2432_s24 }
  0xb7   : > { %v803_v0 = vpop.permute.xlu1 %802 }
  0xb8   : > { %v903_v29 = vpop.permute.xlu0 %902 }
  0xb9   : > { %1019 = vrot.lane.b32.xlu1 %v650_v12, %s2433_s25 }
  0xba   : > { %1305 = vrot.lane.b32.xlu0 %v652_v3, %s2436_s12 }
  0xbb   : > { %v905_v28 = vpop.permute.xlu1 %904 }
  0xbc   : > { %v1004_v10 = vpop.permute.xlu0 %1003 }
  0xbd   : > { %723 = vrot.lane.b32.xlu1 %v650_v12, %s2430_s22  ;;  %v2402_v12 = vunpack.i.l.bf16 %v2401_v36 }
  0xbe   : > { %1021 = vrot.lane.b32.xlu0 %v652_v3, %s2433_s25 }
  0xbf   : > { %v2929_v6 = vpop.permute.xlu1 %707 }
  0xc0   : > { %v1006_v9 = vpop.permute.xlu0 %1005 }
  0xc1   : > { %1115 = vrot.lane.b32.xlu1 %v2609_v13, %s2434_s8 }
  0xc2   : > { %725 = vrot.lane.b32.xlu0 %v652_v3, %s2430_s22  ;;  %v1388_v3 = vsel %vm1387_vm4, %v2476_v2, %v2397_v19 }
  0xc3   : > { %v1100_v33 = vpop.permute.xlu1 %1099  ;;  %v1421_v53 = vsel %vm1420_vm5, %v1388_v3, %v2402_v12  ;;  %v655_v12 = vsel %vm622_vm2, %v653_v5, %v654_v8  ;;  %v656_v3 = vrot.slane %v2616_v17, 2 }
  0xc4   : > { %v2934_v47 = vpop.permute.xlu0 %709  ;;  %v1454_v19 = vsel %vm1453_vm6, %v1421_v53, %v801_v40  ;;  %v1422_v53 = vsel %vm1420_vm5, %v1389_v62, %v2403_v27 }
  0xc5   : > { %820 = vrot.lane.b32.xlu1 %v2609_v13, %s2431_s23  ;;  %v1487_v40 = vsel %vm1486_vm7, %v1454_v19, %v903_v29  ;;  %v657_v60 = vsel %vm622_vm2, %v654_v8, %v656_v3  ;;  %v1455_v17 = vsel %vm1453_vm6, %v1422_v53, %v803_v0  ;;  %v659_v53 = vrot.slane %v2640_v38, 2 }
  0xc6   : > { %1117 = vrot.lane.b32.xlu0 %v2613_v16, %s2434_s8  ;;  %v1488_v29 = vsel %vm1486_vm7, %v1455_v17, %v905_v28 }
  0xc7   : > { %v2941_v46 = vpop.permute.xlu1 %804  ;;  %v1521_v19 = vsel %vm1519_vm8, %v1488_v29, %v1006_v9 }
  0xc8   : > { %v1102_v45 = vpop.permute.xlu0 %1101 }
  0xc9   : > { %1211 = vrot.lane.b32.xlu1 %v2655_v54, %s2435_s11 }
  0xca   : > { %822 = vrot.lane.b32.xlu0 %v2613_v16, %s2431_s23 }
  0xcb   : > { %v1196_v34 = vpop.permute.xlu1 %1195 }
  0xcc   : > { %v2953_v51 = vpop.permute.xlu0 %806 }
  0xcd   : > { %922 = vrot.lane.b32.xlu1 %v2655_v54, %s2432_s24  ;;  %v1520_v54 = vsel %vm1519_vm8, %v1487_v40, %v1004_v10 }
  0xce   : > { %1213 = vrot.lane.b32.xlu0 %v2658_v55, %s2435_s11  ;;  %v1553_v5 = vsel %vm1552_vm9, %v1520_v54, %v1100_v33 }
  0xcf   : > { %v907_v2 = vpop.permute.xlu1 %906  ;;  %v1586_v1 = vsel %vm1585_vm10, %v1553_v5, %v1196_v34  ;;  %v1390_v5 = vsel %vm1387_vm4, %v2513_v25, %v2840_v63 }
  0xd0   : > { %v1198_v36 = vpop.permute.xlu0 %1197 }
  0xd1   : > { %1307 = vrot.lane.b32.xlu1 %v655_v12, %s2436_s12 }
  0xd2   : > { %924 = vrot.lane.b32.xlu0 %v2658_v55, %s2432_s24  ;;  %v1554_v55 = vsel %vm1552_vm9, %v1521_v19, %v1102_v45 }
  0xd3   : > { %v1292_v27 = vpop.permute.xlu1 %1291  ;;  %v1587_v0 = vsel %vm1585_vm10, %v1554_v55, %v1198_v36  ;;  %v658_v36 = vrot.slane %v2634_v31, 2 }
  0xd4   : > { %v909_v62 = vpop.permute.xlu0 %908  ;;  %v1619_v10 = vsel %vm1618_vm11, %v1586_v1, %v1292_v27  ;;  %v661_v27 = vrot.slane %v2643_v39, 2 }
  0xd5   : > { %1023 = vrot.lane.b32.xlu1 %v655_v12, %s2433_s25  ;;  %2313 = vmatprep.mubr.msk.f32.mxu0 %vm1663_vm12, %v1619_v10  ;;  %v660_v17 = vsel %vm622_vm2, %v658_v36, %v659_v53 }
  0xd6   : > { %1309 = vrot.lane.b32.xlu0 %v657_v60, %s2436_s12 }
  0xd7   : > { %v1008_v34 = vpop.permute.xlu1 %1007 }
  0xd8   : > { %v1294_v8 = vpop.permute.xlu0 %1293 }
  0xd9   : > { %v1620_v33 = vsel %vm1618_vm11, %v1587_v0, %v1294_v8  ;;  %727 = vrot.lane.b32.xlu1 %v655_v12, %s2430_s22 }
  0xda   : > { %1025 = vrot.lane.b32.xlu0 %v657_v60, %s2433_s25  ;;  %2314 = vmatmul.mubr.msk.f32.vlgmr.msra.gmra.mrb[0].mxu0 %vm1663_vm12, %v1620_v33 }
  0xdb   : > { %v2986_v1 = vpop.permute.xlu1 %711 }
  0xdc   : > { %v1010_v28 = vpop.permute.xlu0 %1009 }
  0xdd   : > { %1119 = vrot.lane.b32.xlu1 %v2634_v31, %s2434_s8 }
  0xde   : > { %729 = vrot.lane.b32.xlu0 %v657_v60, %s2430_s22  ;;  %v1423_v60 = vsel %vm1420_vm5, %v1390_v5, %v2929_v6  ;;  %v662_v6 = vsel %vm622_vm2, %v659_v53, %v661_v27  ;;  %v663_v5 = vrot.slane %v2663_v58, 2 }
  0xdf   : > { %v1104_v45 = vpop.permute.xlu1 %1103  ;;  %v1456_v29 = vsel %vm1453_vm6, %v1423_v60, %v2941_v46  ;;  %v664_v60 = vrot.slane %v2668_v4, 2 }
  0xe0   : > { %v2991_v9 = vpop.permute.xlu0 %713  ;;  %v1489_v25 = vsel %vm1486_vm7, %v1456_v29, %v907_v2  ;;  %v1392_v29 = vsel %vm1387_vm4, %v2523_v32, %v2846_v37 }
  0xe1   : > { %824 = vrot.lane.b32.xlu1 %v2634_v31, %s2431_s23  ;;  %v1522_v63 = vsel %vm1519_vm8, %v1489_v25, %v1008_v34  ;;  %v665_v25 = vsel %vm622_vm2, %v663_v5, %v664_v60  ;;  %v1394_v5 = vsel %vm1387_vm4, %v2546_v41, %v2856_v59 }
  0xe2   : > { %1121 = vrot.lane.b32.xlu0 %v2640_v38, %s2434_s8  ;;  %v1555_v46 = vsel %vm1552_vm9, %v1522_v63, %v1104_v45 }
  0xe3   : > { %v2997_v12 = vpop.permute.xlu1 %808 }
  0xe4   : > { %v1106_v3 = vpop.permute.xlu0 %1105 }
  0xe5   : > { %1215 = vrot.lane.b32.xlu1 %v2680_v14, %s2435_s11 }
  0xe6   : > { %826 = vrot.lane.b32.xlu0 %v2640_v38, %s2431_s23 }
  0xe7   : > { %v1200_v40 = vpop.permute.xlu1 %1199 }
  0xe8   : > { %v3005_v54 = vpop.permute.xlu0 %810  ;;  %v1588_v55 = vsel %vm1585_vm10, %v1555_v46, %v1200_v40 }
  0xe9   : > { %926 = vrot.lane.b32.xlu1 %v2680_v14, %s2432_s24  ;;  %v1391_v14 = vsel %vm1387_vm4, %v2507_v23, %v2838_v43 }
  0xea   : > { %1217 = vrot.lane.b32.xlu0 %v2683_v15, %s2435_s11  ;;  %v1424_v39 = vsel %vm1420_vm5, %v1391_v14, %v2934_v47  ;;  %v666_v14 = vrot.slane %v2671_v7, 2 }
  0xeb   : > { %v911_v10 = vpop.permute.xlu1 %910  ;;  %v1457_v2 = vsel %vm1453_vm6, %v1424_v39, %v2953_v51 }
  0xec   : > { %v1202_v19 = vpop.permute.xlu0 %1201  ;;  %v1490_v0 = vsel %vm1486_vm7, %v1457_v2, %v909_v62 }
  0xed   : > { %1311 = vrot.lane.b32.xlu1 %v660_v17, %s2436_s12 }
  0xee   : > { %928 = vrot.lane.b32.xlu0 %v2683_v15, %s2432_s24  ;;  %v1523_v15 = vsel %vm1519_vm8, %v1490_v0, %v1010_v28 }
  0xef   : > { %v1296_v23 = vpop.permute.xlu1 %1295  ;;  %v1556_v47 = vsel %vm1552_vm9, %v1523_v15, %v1106_v3 }
  0xf0   : > { %v913_v43 = vpop.permute.xlu0 %912  ;;  %v1621_v34 = vsel %vm1618_vm11, %v1588_v55, %v1296_v23  ;;  %v1589_v51 = vsel %vm1585_vm10, %v1556_v47, %v1202_v19  ;;  %v1425_v19 = vsel %vm1420_vm5, %v1392_v29, %v2986_v1  ;;  %v671_v29 = vrot.slane %v2695_v26, 2 }
  0xf1   : > { %1027 = vrot.lane.b32.xlu1 %v660_v17, %s2433_s25  ;;  %2316 = vmatprep.mubr.msk.f32.mxu0 %vm1663_vm12, %v1621_v34  ;;  %v1458_v63 = vsel %vm1453_vm6, %v1425_v19, %v2997_v12  ;;  %v667_v12 = vsel %vm622_vm2, %v664_v60, %v666_v14 }
  0xf2   : > { %1313 = vrot.lane.b32.xlu0 %v662_v6, %s2436_s12  ;;  %v1491_v32 = vsel %vm1486_vm7, %v1458_v63, %v911_v10 }
  0xf3   : > { %v1012_v8 = vpop.permute.xlu1 %1011 }
  0xf4   : > { %v1298_v33 = vpop.permute.xlu0 %1297  ;;  %v1524_v37 = vsel %vm1519_vm8, %v1491_v32, %v1012_v8 }
  0xf5   : > { %v1622_v45 = vsel %vm1618_vm11, %v1589_v51, %v1298_v33  ;;  %731 = vrot.lane.b32.xlu1 %v660_v17, %s2430_s22 }
  0xf6   : > { %1029 = vrot.lane.b32.xlu0 %v662_v6, %s2433_s25  ;;  %2317 = vmatmul.mubr.msk.f32.gmra.mrb[2].mxu0 %vm1663_vm12, %v1622_v45  ;;  %v668_v45 = vrot.slane %v2692_v22, 2 }
  0xf7   : > { %v3047_v62 = vpop.permute.xlu1 %715 }
  0xf8   : > { %v1014_v28 = vpop.permute.xlu0 %1013  ;;  %v1427_v60 = vsel %vm1420_vm5, %v1394_v5, %v3047_v62 }
  0xf9   : > { %1123 = vrot.lane.b32.xlu1 %v2663_v58, %s2434_s8 }
  0xfa   : > { %733 = vrot.lane.b32.xlu0 %v662_v6, %s2430_s22 }
  0xfb   : > { %v1108_v3 = vpop.permute.xlu1 %1107 }
  0xfc   : > { %v3052_v36 = vpop.permute.xlu0 %717  ;;  %v1557_v1 = vsel %vm1552_vm9, %v1524_v37, %v1108_v3 }
  0xfd   : > { %828 = vrot.lane.b32.xlu1 %v2663_v58, %s2431_s23 }
  0xfe   : > { %1125 = vrot.lane.b32.xlu0 %v2668_v4, %s2434_s8 }
  0xff   : > { %v3058_v53 = vpop.permute.xlu1 %812 }
 0x100   : > { %v1110_v40 = vpop.permute.xlu0 %1109  ;;  %v1460_v19 = vsel %vm1453_vm6, %v1427_v60, %v3058_v53 }
 0x101   : > { %1219 = vrot.lane.b32.xlu1 %v2704_v42, %s2435_s11 }
 0x102   : > { %830 = vrot.lane.b32.xlu0 %v2668_v4, %s2431_s23 }
 0x103   : > { %v1204_v17 = vpop.permute.xlu1 %1203 }
 0x104   : > { %v3066_v27 = vpop.permute.xlu0 %814  ;;  %v1590_v6 = vsel %vm1585_vm10, %v1557_v1, %v1204_v17 }
 0x105   : > { %930 = vrot.lane.b32.xlu1 %v2704_v42, %s2432_s24  ;;  %v1393_v42 = vsel %vm1387_vm4, %v2519_v30, %v2848_v24 }
 0x106   : > { %1221 = vrot.lane.b32.xlu0 %v2707_v44, %s2435_s11  ;;  %v1426_v7 = vsel %vm1420_vm5, %v1393_v42, %v2991_v9 }
 0x107   : > { %v915_v39 = vpop.permute.xlu1 %914  ;;  %v1459_v10 = vsel %vm1453_vm6, %v1426_v7, %v3005_v54 }
 0x108   : > { %v1206_v46 = vpop.permute.xlu0 %1205  ;;  %v1492_v2 = vsel %vm1486_vm7, %v1459_v10, %v913_v43  ;;  %v1493_v41 = vsel %vm1486_vm7, %v1460_v19, %v915_v39 }
 0x109   : > { %1315 = vrot.lane.b32.xlu1 %v665_v25, %s2436_s12 }
 0x10a   : > { %932 = vrot.lane.b32.xlu0 %v2707_v44, %s2432_s24  ;;  %v1525_v44 = vsel %vm1519_vm8, %v1492_v2, %v1014_v28  ;;  %v669_v28 = vrot.slane %v2689_v21, 2  ;;  %v673_v2 = vrot.slane %v2714_v49, 2 }
 0x10b   : > { %v1300_v30 = vpop.permute.xlu1 %1299  ;;  %v1558_v9 = vsel %vm1552_vm9, %v1525_v44, %v1110_v40 }
 0x10c   : > { %v917_v24 = vpop.permute.xlu0 %916  ;;  %v1623_v55 = vsel %vm1618_vm11, %v1590_v6, %v1300_v30  ;;  %v1591_v54 = vsel %vm1585_vm10, %v1558_v9, %v1206_v46  ;;  %v670_v17 = vsel %vm622_vm2, %v668_v45, %v669_v28  ;;  %v672_v53 = vsel %vm622_vm2, %v669_v28, %v671_v29  ;;  %v234_v29 = vld [vmem:[%s2491_s20 + $0xa0] sm:$0xff] }
 0x10d   : > { %1031 = vrot.lane.b32.xlu1 %v665_v25, %s2433_s25  ;;  %2319 = vmatprep.mubr.msk.f32.mxu0 %vm1663_vm12, %v1623_v55  ;;  %v674_v55 = vrot.slane %v2711_v48, 2 }
 0x10e   : > { %1317 = vrot.lane.b32.xlu0 %v667_v12, %s2436_s12 }
 0x10f   : > { %v1016_v23 = vpop.permute.xlu1 %1015 }
 0x110   : > { %v1302_v0 = vpop.permute.xlu0 %1301  ;;  %v1526_v59 = vsel %vm1519_vm8, %v1493_v41, %v1016_v23 }
 0x111   : > { %v1624_v34 = vsel %vm1618_vm11, %v1591_v54, %v1302_v0  ;;  %735 = vrot.lane.b32.xlu1 %v665_v25, %s2430_s22  ;;  %v1396_v54 = vsel %vm1387_vm4, %v2566_v52, %v2866_v20  ;;  %v675_v0 = vsel %vm622_vm2, %v673_v2, %v674_v55  ;;  %v3999_v20 = vld [vmem:[#allocation9_spill] sm:$0xff] }
 0x112   : > { %1033 = vrot.lane.b32.xlu0 %v667_v12, %s2433_s25  ;;  %2320 = vmatmul.mubr.msk.f32.gmra.mrb[4].mxu0 %vm1663_vm12, %v1624_v34  ;;  %v676_v34 = vrot.slane %v2717_v50, 2 }
 0x113   : > { %v3108_v43 = vpop.permute.xlu1 %719 }
 0x114   : > { %v1018_v15 = vpop.permute.xlu0 %1017  ;;  %v1429_v23 = vsel %vm1420_vm5, %v1396_v54, %v3108_v43  ;;  %v677_v28 = vsel %vm622_vm2, %v674_v55, %v676_v34  ;;  %v4002_v54 = vld [vmem:[#allocation6_spill] sm:$0xff] }
 0x115   : > { %1127 = vrot.lane.b32.xlu1 %v2692_v22, %s2434_s8 }
 0x116   : > { %737 = vrot.lane.b32.xlu0 %v667_v12, %s2430_s22 }
 0x117   : > { %v1112_v47 = vpop.permute.xlu1 %1111 }
 0x118   : > { %v3113_v51 = vpop.permute.xlu0 %721  ;;  %v1559_v62 = vsel %vm1552_vm9, %v1526_v59, %v1112_v47 }
 0x119   : > { %832 = vrot.lane.b32.xlu1 %v2692_v22, %s2431_s23 }
 0x11a   : > { %1129 = vrot.lane.b32.xlu0 %v2689_v21, %s2434_s8 }
 0x11b   : > { %v3119_v8 = vpop.permute.xlu1 %816 }
 0x11c   : > { %v1114_v33 = vpop.permute.xlu0 %1113 }
 0x11d   : > { %1223 = vrot.lane.b32.xlu1 %v2724_v56, %s2435_s11 }
 0x11e   : > { %834 = vrot.lane.b32.xlu0 %v2689_v21, %s2431_s23 }
 0x11f   : > { %v1208_v3 = vpop.permute.xlu1 %1207 }
 0x120   : > { %v3127_v40 = vpop.permute.xlu0 %818  ;;  %v1592_v39 = vsel %vm1585_vm10, %v1559_v62, %v1208_v3 }
 0x121   : > { %934 = vrot.lane.b32.xlu1 %v2724_v56, %s2432_s24  ;;  %v1395_v56 = vsel %vm1387_vm4, %v2530_v35, %v2858_v61 }
 0x122   : > { %1225 = vrot.lane.b32.xlu0 %v2727_v57, %s2435_s11  ;;  %v1428_v26 = vsel %vm1420_vm5, %v1395_v56, %v3052_v36 }
 0x123   : > { %v919_v25 = vpop.permute.xlu1 %918  ;;  %v1461_v63 = vsel %vm1453_vm6, %v1428_v26, %v3066_v27 }
 0x124   : > { %v1210_v14 = vpop.permute.xlu0 %1209  ;;  %v1494_v46 = vsel %vm1486_vm7, %v1461_v63, %v917_v24 }
 0x125   : > { %1319 = vrot.lane.b32.xlu1 %v670_v17, %s2436_s12 }
 0x126   : > { %936 = vrot.lane.b32.xlu0 %v2727_v57, %s2432_s24  ;;  %v1527_v57 = vsel %vm1519_vm8, %v1494_v46, %v1018_v15  ;;  %v1462_v15 = vsel %vm1453_vm6, %v1429_v23, %v3119_v8 }
 0x127   : > { %v1304_v35 = vpop.permute.xlu1 %1303  ;;  %v1560_v36 = vsel %vm1552_vm9, %v1527_v57, %v1114_v33  ;;  %v4000_v33 = vld [vmem:[#allocation5_spill] sm:$0xff] }
 0x128   : > { %v921_v61 = vpop.permute.xlu0 %920  ;;  %v1625_v32 = vsel %vm1618_vm11, %v1592_v39, %v1304_v35  ;;  %v1593_v27 = vsel %vm1585_vm10, %v1560_v36, %v1210_v14  ;;  %v1397_v45 = vsel %vm1387_vm4, %v4000_v33, %v3999_v20  ;;  %v4003_v33 = vld [vmem:[#allocation11_spill] sm:$0xff] }
 0x129   : > { %1035 = vrot.lane.b32.xlu1 %v670_v17, %s2433_s25  ;;  %2322 = vmatprep.mubr.msk.f32.mxu0 %vm1663_vm12, %v1625_v32  ;;  %v1430_v50 = vsel %vm1420_vm5, %v1397_v45, %v3113_v51  ;;  %v4004_v45 = vld [vmem:[#allocation7_spill] sm:$0xff] }
 0x12a   : > { %1321 = vrot.lane.b32.xlu0 %v672_v53, %s2436_s12  ;;  %v1463_v3 = vsel %vm1453_vm6, %v1430_v50, %v3127_v40  ;;  %v312_v40 = vrot.slane %v234_v29, 7 }
 0x12b   : > { %v1020_v42 = vpop.permute.xlu1 %1019  ;;  %v1496_v19 = vsel %vm1486_vm7, %v1463_v3, %v921_v61 }
 0x12c   : > { %v1306_v37 = vpop.permute.xlu0 %1305 }
 0x12d   : > { %v1626_v7 = vsel %vm1618_vm11, %v1593_v27, %v1306_v37  ;;  %739 = vrot.lane.b32.xlu1 %v670_v17, %s2430_s22 }
 0x12e   : > { %1037 = vrot.lane.b32.xlu0 %v672_v53, %s2433_s25  ;;  %2323 = vmatmul.mubr.msk.f32.gmra.mrb[6].mxu0 %vm1663_vm12, %v1626_v7 }
 0x12f   : > { %v3169_v1 = vpop.permute.xlu1 %723 }
 0x130   : > { %v1022_v12 = vpop.permute.xlu0 %1021 }
 0x131   : > { %1131 = vrot.lane.b32.xlu1 %v2714_v49, %s2434_s8  ;;  %v1529_v51 = vsel %vm1519_vm8, %v1496_v19, %v1022_v12 }
 0x132   : > { %741 = vrot.lane.b32.xlu0 %v672_v53, %s2430_s22  ;;  %v3237_v53 = vsel %vm279_vm0, 0.0, %v312_v40 }
 0x133   : > { %v1116_v10 = vpop.permute.xlu1 %1115  ;;  %v501_v61 = vrot.slane %v3237_v53, 1 }
 0x134   : > { %v3174_v6 = vpop.permute.xlu0 %725 }
 0x135   : > { %836 = vrot.lane.b32.xlu1 %v2714_v49, %s2431_s23 }
 0x136   : > { %1133 = vrot.lane.b32.xlu0 %v2711_v48, %s2434_s8 }
 0x137   : > { %v3180_v30 = vpop.permute.xlu1 %820 }
 0x138   : > { %v1118_v24 = vpop.permute.xlu0 %1117 }
 0x139   : > { %1227 = vrot.lane.b32.xlu1 %v2737_v11, %s2435_s11  ;;  %v1562_v14 = vsel %vm1552_vm9, %v1529_v51, %v1118_v24 }
 0x13a   : > { %838 = vrot.lane.b32.xlu0 %v2711_v48, %s2431_s23 }
 0x13b   : > { %v1212_v44 = vpop.permute.xlu1 %1211 }
 0x13c   : > { %v3188_v9 = vpop.permute.xlu0 %822 }
 0x13d   : > { %938 = vrot.lane.b32.xlu1 %v2737_v11, %s2432_s24  ;;  %v1495_v11 = vsel %vm1486_vm7, %v1462_v15, %v919_v25  ;;  %v235_v25 = vld [vmem:[%s2491_s20 + $0xa8] sm:$0xff] }
 0x13e   : > { %1229 = vrot.lane.b32.xlu0 %v2740_v18, %s2435_s11  ;;  %v1528_v43 = vsel %vm1519_vm8, %v1495_v11, %v1020_v42  ;;  %v313_v26 = vrot.slane %v235_v25, 7 }
 0x13f   : > { %v3203_v47 = vpop.permute.xlu1 %922  ;;  %v1561_v8 = vsel %vm1552_vm9, %v1528_v43, %v1116_v10  ;;  %v678_v10 = vrot.slane %v3237_v53, 2  ;;  %v1399_v43 = vsel %vm1387_vm4, %v4004_v45, %v4003_v33  ;;  %v4006_v45 = vld [vmem:[#allocation13_spill] sm:$0xff] }
 0x140   : > { %v1214_v52 = vpop.permute.xlu0 %1213  ;;  %v1594_v5 = vsel %vm1585_vm10, %v1561_v8, %v1212_v44  ;;  %v3242_v35 = vsel %vm279_vm0, %v312_v40, %v313_v26  ;;  %v407_v36 = vsel %vm279_vm0, %v313_v26, 0.0  ;;  %v4001_v44 = vld [vmem:[#allocation10_spill] sm:$0xff]  ;;  %v237_v40 = vld [vmem:[%s2491_s20 + $0xb8] sm:$0xff] }
 0x141   : > { %1323 = vrot.lane.b32.xlu1 %v675_v0, %s2436_s12  ;;  %v1595_v41 = vsel %vm1585_vm10, %v1562_v14, %v1214_v52  ;;  %v502_v46 = vrot.slane %v3242_v35, 1  ;;  %v504_v42 = vrot.slane %v407_v36, 1  ;;  %v679_v24 = vrot.slane %v3242_v35, 2  ;;  %v236_v14 = vld [vmem:[%s2491_s20 + $0xb0] sm:$0xff] }
 0x142   : > { %940 = vrot.lane.b32.xlu0 %v2740_v18, %s2432_s24  ;;  %v1398_v23 = vsel %vm1387_vm4, %v4002_v54, %v4001_v44  ;;  %v681_v8 = vrot.slane %v407_v36, 2  ;;  %v316_v26 = vrot.slane %v237_v40, 7  ;;  %v4005_v44 = vld [vmem:[#allocation12_spill] sm:$0xff] }
 0x143   : > { %v1308_v60 = vpop.permute.xlu1 %1307  ;;  %v503_v27 = vsel %vm445_vm1, %v501_v61, %v502_v46  ;;  %v505_v12 = vsel %vm445_vm1, %v502_v46, %v504_v42  ;;  %v680_v34 = vsel %vm622_vm2, %v678_v10, %v679_v24  ;;  %v1400_v54 = vsel %vm1387_vm4, %v2609_v13, %v4005_v44 }
 0x144   : > { %v3220_v17 = vpop.permute.xlu0 %924  ;;  %v1627_v18 = vsel %vm1618_vm11, %v1594_v5, %v1308_v60 }
 0x145   : > { %1039 = vrot.lane.b32.xlu1 %v675_v0, %s2433_s25  ;;  %2325 = vmatprep.mubr.msk.f32.mxu0 %vm1663_vm12, %v1627_v18 }
 0x146   : > { %1325 = vrot.lane.b32.xlu0 %v677_v28, %s2436_s12 }
 0x147   : > { %v1024_v56 = vpop.permute.xlu1 %1023 }
 0x148   : > { %v1310_v59 = vpop.permute.xlu0 %1309 }
 0x149   : > { %v1628_v62 = vsel %vm1618_vm11, %v1595_v41, %v1310_v59  ;;  %743 = vrot.lane.b32.xlu1 %v675_v0, %s2430_s22  ;;  %v1431_v0 = vsel %vm1420_vm5, %v1398_v23, %v3169_v1  ;;  %v1432_v1 = vsel %vm1420_vm5, %v1399_v43, %v3174_v6  ;;  %v315_v41 = vrot.slane %v236_v14, 7 }
 0x14a   : > { %1041 = vrot.lane.b32.xlu0 %v677_v28, %s2433_s25  ;;  %2326 = vmatmul.mubr.msk.f32.gmra.mrb[8].mxu0 %vm1663_vm12, %v1628_v62  ;;  %v1464_v15 = vsel %vm1453_vm6, %v1431_v0, %v3180_v30  ;;  %v1401_v43 = vsel %vm1387_vm4, %v2613_v16, %v4006_v45 }
 0x14b   : > { %v3239_v63 = vpop.permute.xlu1 %727  ;;  %v1497_v20 = vsel %vm1486_vm7, %v1464_v15, %v3203_v47  ;;  %v1465_v47 = vsel %vm1453_vm6, %v1432_v1, %v3188_v9  ;;  %v682_v9 = vsel %vm622_vm2, %v679_v24, %v681_v8  ;;  %v3316_v62 = vsel %vm279_vm0, 0.0, %v315_v41 }
 0x14c   : > { %v1026_v39 = vpop.permute.xlu0 %1025  ;;  %v1530_v50 = vsel %vm1519_vm8, %v1497_v20, %v1024_v56  ;;  %v1498_v60 = vsel %vm1486_vm7, %v1465_v47, %v3220_v17  ;;  %v3321_v46 = vsel %vm279_vm0, %v315_v41, %v316_v26  ;;  %v1433_v23 = vsel %vm1420_vm5, %v1400_v54, %v3239_v63 }
 0x14d   : > { %1135 = vrot.lane.b32.xlu1 %v3237_v53, %s2434_s8  ;;  %v1531_v6 = vsel %vm1519_vm8, %v1498_v60, %v1026_v39  ;;  %v507_v36 = vrot.slane %v3321_v46, 1  ;;  %v684_v15 = vrot.slane %v3321_v46, 2 }
 0x14e   : > { %745 = vrot.lane.b32.xlu0 %v677_v28, %s2430_s22 }
 0x14f   : > { %v1120_v32 = vpop.permute.xlu1 %1119 }
 0x150   : > { %v3249_v57 = vpop.permute.xlu0 %729  ;;  %v1563_v30 = vsel %vm1552_vm9, %v1530_v50, %v1120_v32  ;;  %v506_v32 = vrot.slane %v3316_v62, 1 }
 0x151   : > { %840 = vrot.lane.b32.xlu1 %v3237_v53, %s2431_s23  ;;  %v1434_v50 = vsel %vm1420_vm5, %v1401_v43, %v3249_v57 }
 0x152   : > { %1137 = vrot.lane.b32.xlu0 %v3242_v35, %s2434_s8 }
 0x153   : > { %v3257_v37 = vpop.permute.xlu1 %824 }
 0x154   : > { %v1122_v7 = vpop.permute.xlu0 %1121 }
 0x155   : > { %1231 = vrot.lane.b32.xlu1 %v503_v27, %s2435_s11  ;;  %v1564_v19 = vsel %vm1552_vm9, %v1531_v6, %v1122_v7  ;;  %v408_v7 = vsel %vm279_vm0, %v316_v26, 0.0 }
 0x156   : > { %842 = vrot.lane.b32.xlu0 %v3242_v35, %s2431_s23  ;;  %v509_v10 = vrot.slane %v408_v7, 1 }
 0x157   : > { %v1216_v2 = vpop.permute.xlu1 %1215 }
 0x158   : > { %v3265_v55 = vpop.permute.xlu0 %826  ;;  %v1596_v28 = vsel %vm1585_vm10, %v1563_v30, %v1216_v2  ;;  %v510_v0 = vsel %vm445_vm1, %v507_v36, %v509_v10 }
 0x159   : > { %942 = vrot.lane.b32.xlu1 %v503_v27, %s2432_s24 }
 0x15a   : > { %1233 = vrot.lane.b32.xlu0 %v505_v12, %s2435_s11 }
 0x15b   : > { %v3277_v52 = vpop.permute.xlu1 %926 }
 0x15c   : > { %v1218_v11 = vpop.permute.xlu0 %1217 }
 0x15d   : > { %1327 = vrot.lane.b32.xlu1 %v680_v34, %s2436_s12  ;;  %v1597_v18 = vsel %vm1585_vm10, %v1564_v19, %v1218_v11  ;;  %v1466_v11 = vsel %vm1453_vm6, %v1433_v23, %v3257_v37 }
 0x15e   : > { %570 = vrot.lane.b32.xlu0 %v503_v27, %s2429_s21  ;;  %v1499_v33 = vsel %vm1486_vm7, %v1466_v11, %v3277_v52  ;;  %v1467_v52 = vsel %vm1453_vm6, %v1434_v50, %v3265_v55  ;;  %v686_v55 = vrot.slane %v408_v7, 2 }
 0x15f   : > { %v1312_v3 = vpop.permute.xlu1 %1311 }
 0x160   : > { %v3293_v5 = vpop.permute.xlu0 %928  ;;  %v1629_v29 = vsel %vm1618_vm11, %v1596_v28, %v1312_v3  ;;  %v687_v19 = vsel %vm622_vm2, %v684_v15, %v686_v55 }
 0x161   : > { %944 = vrot.lane.b32.xlu1 %v505_v12, %s2432_s24  ;;  %2328 = vmatprep.mubr.msk.f32.mxu0 %vm1663_vm12, %v1629_v29  ;;  %v1500_v47 = vsel %vm1486_vm7, %v1467_v52, %v3293_v5 }
 0x162   : > { %1043 = vrot.lane.b32.xlu0 %v680_v34, %s2433_s25 }
 0x163   : > { %v1028_v25 = vpop.permute.xlu1 %1027 }
 0x164   : > { %v1314_v51 = vpop.permute.xlu0 %1313  ;;  %v1532_v63 = vsel %vm1519_vm8, %v1499_v33, %v1028_v25  ;;  %v238_v25 = vld [vmem:[%s2491_s20 + $0xc0] sm:$0xff] }
 0x165   : > { %v1630_v17 = vsel %vm1618_vm11, %v1597_v18, %v1314_v51  ;;  %1329 = vrot.lane.b32.xlu1 %v682_v9, %s2436_s12  ;;  %v239_v51 = vld [vmem:[%s2491_s20 + $0xc8] sm:$0xff]  ;;  %v318_v14 = vrot.slane %v238_v25, 7 }
 0x166   : > { %572 = vrot.lane.b32.xlu0 %v505_v12, %s2429_s21  ;;  %2329 = vmatmul.mubr.msk.f32.gmra.mrb[10].mxu0 %vm1663_vm12, %v1630_v17  ;;  %v508_v12 = vsel %vm445_vm1, %v506_v32, %v507_v36  ;;  %v319_v41 = vrot.slane %v239_v51, 7 }
 0x167   : > { %v3311_v56 = vpop.permute.xlu1 %731 }
 0x168   : > { %v1030_v59 = vpop.permute.xlu0 %1029  ;;  %v3400_v32 = vsel %vm279_vm0, %v318_v14, %v319_v41  ;;  %v409_v7 = vsel %vm279_vm0, %v319_v41, 0.0 }
 0x169   : > { %747 = vrot.lane.b32.xlu1 %v680_v34, %s2430_s22  ;;  %v683_v34 = vrot.slane %v3316_v62, 2  ;;  %v1533_v3 = vsel %vm1519_vm8, %v1500_v47, %v1030_v59  ;;  %v3395_v59 = vsel %vm279_vm0, 0.0, %v318_v14  ;;  %v514_v54 = vrot.slane %v409_v7, 1 }
 0x16a   : > { %1045 = vrot.lane.b32.xlu0 %v682_v9, %s2433_s25  ;;  %v511_v36 = vrot.slane %v3395_v59, 1 }
 0x16b   : > { %v1124_v39 = vpop.permute.xlu1 %1123  ;;  %v685_v1 = vsel %vm622_vm2, %v683_v34, %v684_v15 }
 0x16c   : > { %v3318_v61 = vpop.permute.xlu0 %733  ;;  %v1565_v37 = vsel %vm1552_vm9, %v1532_v63, %v1124_v39  ;;  %v689_v63 = vrot.slane %v3400_v32, 2 }
 0x16d   : > { %1139 = vrot.lane.b32.xlu1 %v3316_v62, %s2434_s8 }
 0x16e   : > { %749 = vrot.lane.b32.xlu0 %v682_v9, %s2430_s22 }
 0x16f   : > { %v3328_v27 = vpop.permute.xlu1 %828 }
 0x170   : > { %v1126_v42 = vpop.permute.xlu0 %1125 }
 0x171   : > { %844 = vrot.lane.b32.xlu1 %v3316_v62, %s2431_s23  ;;  %v1566_v57 = vsel %vm1552_vm9, %v1533_v3, %v1126_v42  ;;  %v512_v42 = vrot.slane %v3400_v32, 1 }
 0x172   : > { %1141 = vrot.lane.b32.xlu0 %v3321_v46, %s2434_s8 }
 0x173   : > { %v1220_v24 = vpop.permute.xlu1 %1219 }
 0x174   : > { %v3336_v2 = vpop.permute.xlu0 %830  ;;  %v1598_v30 = vsel %vm1585_vm10, %v1565_v37, %v1220_v24  ;;  %v4007_v24 = vld [vmem:[#allocation14_spill] sm:$0xff] }
 0x175   : > { %1235 = vrot.lane.b32.xlu1 %v508_v12, %s2435_s11  ;;  %v1402_v44 = vsel %vm1387_vm4, %v2634_v31, %v4007_v24 }
 0x176   : > { %846 = vrot.lane.b32.xlu0 %v3321_v46, %s2431_s23  ;;  %v1435_v23 = vsel %vm1420_vm5, %v1402_v44, %v3311_v56  ;;  %v515_v56 = vsel %vm445_vm1, %v512_v42, %v514_v54  ;;  %v1990_v54 = vld [vmem:[%s3478_s18 + $0x8] sm:$0xff] }
 0x177   : > { %v3351_v20 = vpop.permute.xlu1 %930  ;;  %v1468_v34 = vsel %vm1453_vm6, %v1435_v23, %v3328_v27 }
 0x178   : > { %v1222_v13 = vpop.permute.xlu0 %1221  ;;  %v1501_v31 = vsel %vm1486_vm7, %v1468_v34, %v3351_v20  ;;  %v688_v20 = vrot.slane %v3395_v59, 2 }
 0x179   : > { %946 = vrot.lane.b32.xlu1 %v508_v12, %s2432_s24  ;;  %v1599_v60 = vsel %vm1585_vm10, %v1566_v57, %v1222_v13  ;;  %v4008_v13 = vld [vmem:[#allocation15_spill] sm:$0xff]  ;;  %v691_v57 = vrot.slane %v409_v7, 2 }
 0x17a   : > { %1237 = vrot.lane.b32.xlu0 %v510_v0, %s2435_s11  ;;  %v1403_v33 = vsel %vm1387_vm4, %v2640_v38, %v4008_v13 }
 0x17b   : > { %v1316_v8 = vpop.permute.xlu1 %1315  ;;  %v1436_v27 = vsel %vm1420_vm5, %v1403_v33, %v3318_v61 }
 0x17c   : > { %v3368_v16 = vpop.permute.xlu0 %932  ;;  %v1631_v28 = vsel %vm1618_vm11, %v1598_v30, %v1316_v8  ;;  %v1469_v38 = vsel %vm1453_vm6, %v1436_v27, %v3336_v2  ;;  %v690_v2 = vsel %vm622_vm2, %v688_v20, %v689_v63  ;;  %v4010_v20 = vld [vmem:[#allocation17_spill] sm:$0xff] }
 0x17d   : > { %1331 = vrot.lane.b32.xlu1 %v685_v1, %s2436_s12  ;;  %2331 = vmatprep.mubr.msk.f32.mxu0 %vm1663_vm12, %v1631_v28  ;;  %v1502_v52 = vsel %vm1486_vm7, %v1469_v38, %v3368_v16 }
 0x17e   : > { %574 = vrot.lane.b32.xlu0 %v508_v12, %s2429_s21 }
 0x17f   : > { %v1032_v29 = vpop.permute.xlu1 %1031 }
 0x180   : > { %v1318_v6 = vpop.permute.xlu0 %1317  ;;  %v1534_v45 = vsel %vm1519_vm8, %v1501_v31, %v1032_v29  ;;  %v692_v29 = vsel %vm622_vm2, %v689_v63, %v691_v57  ;;  %v1405_v63 = vsel %vm1387_vm4, %v2668_v4, %v4010_v20  ;;  %v1992_v20 = vld [vmem:[%s3478_s18 + $0x18] sm:$0xff] }
 0x181   : > { %v1632_v5 = vsel %vm1618_vm11, %v1599_v60, %v1318_v6  ;;  %948 = vrot.lane.b32.xlu1 %v510_v0, %s2432_s24 }
 0x182   : > { %1047 = vrot.lane.b32.xlu0 %v685_v1, %s2433_s25  ;;  %2332 = vmatmul.mubr.msk.f32.gmra.mrb[12].mxu0 %vm1663_vm12, %v1632_v5 }
 0x183   : > { %v3384_v9 = vpop.permute.xlu1 %735 }
 0x184   : > { %v1034_v18 = vpop.permute.xlu0 %1033 }
 0x185   : > { %1333 = vrot.lane.b32.xlu1 %v687_v19, %s2436_s12  ;;  %v1535_v61 = vsel %vm1519_vm8, %v1502_v52, %v1034_v18  ;;  %v241_v18 = vld [vmem:[%s2491_s20 + $0xd8] sm:$0xff] }
 0x186   : > { %576 = vrot.lane.b32.xlu0 %v510_v0, %s2429_s21  ;;  %v513_v0 = vsel %vm445_vm1, %v511_v36, %v512_v42  ;;  %v3488_v42 = vld [vmem:[%s3970_s3] ss:$0 sm:$0xff] }
 0x187   : > { %v1128_v17 = vpop.permute.xlu1 %1127 }
 0x188   : > { %v3390_v40 = vpop.permute.xlu0 %737  ;;  %v1567_v43 = vsel %vm1552_vm9, %v1534_v45, %v1128_v17  ;;  %v322_v17 = vrot.slane %v241_v18, 7 }
 0x189   : > { %751 = vrot.lane.b32.xlu1 %v685_v1, %s2430_s22 }
 0x18a   : > { %1049 = vrot.lane.b32.xlu0 %v687_v19, %s2433_s25 }
 0x18b   : > { %v3397_v26 = vpop.permute.xlu1 %832 }
 0x18c   : > { %v1130_v39 = vpop.permute.xlu0 %1129 }
 0x18d   : > { %1143 = vrot.lane.b32.xlu1 %v3395_v59, %s2434_s8  ;;  %v1568_v8 = vsel %vm1552_vm9, %v1535_v61, %v1130_v39 }
 0x18e   : > { %753 = vrot.lane.b32.xlu0 %v687_v19, %s2430_s22  ;;  %v240_v19 = vld [vmem:[%s2491_s20 + $0xd0] sm:$0xff] }
 0x18f   : > { %v1224_v12 = vpop.permute.xlu1 %1223  ;;  %v321_v25 = vrot.slane %v240_v19, 7 }
 0x190   : > { %v3408_v10 = vpop.permute.xlu0 %834  ;;  %v1600_v50 = vsel %vm1585_vm10, %v1567_v43, %v1224_v12  ;;  %v4009_v12 = vld [vmem:[#allocation16_spill] sm:$0xff]  ;;  %v410_v43 = vsel %vm279_vm0, %v322_v17, 0.0 }
 0x191   : > { %848 = vrot.lane.b32.xlu1 %v3395_v59, %s2431_s23  ;;  %v3481_v41 = vsel %vm279_vm0, 0.0, %v321_v25  ;;  %v3491_v7 = vsel %vm279_vm0, %v321_v25, %v322_v17  ;;  %v1404_v24 = vsel %vm1387_vm4, %v2663_v58, %v4009_v12 }
 0x192   : > { %1145 = vrot.lane.b32.xlu0 %v3400_v32, %s2434_s8  ;;  %v1437_v23 = vsel %vm1420_vm5, %v1404_v24, %v3384_v9  ;;  %v516_v31 = vrot.slane %v3481_v41, 1  ;;  %v517_v13 = vrot.slane %v3491_v7, 1  ;;  %v696_v24 = vrot.slane %v410_v43, 2 }
 0x193   : > { %v3422_v15 = vpop.permute.xlu1 %934  ;;  %v1470_v58 = vsel %vm1453_vm6, %v1437_v23, %v3397_v26  ;;  %v1438_v26 = vsel %vm1420_vm5, %v1405_v63, %v3390_v40 }
 0x194   : > { %v1226_v11 = vpop.permute.xlu0 %1225  ;;  %v1503_v27 = vsel %vm1486_vm7, %v1470_v58, %v3422_v15  ;;  %v518_v52 = vsel %vm445_vm1, %v516_v31, %v517_v13  ;;  %v1471_v4 = vsel %vm1453_vm6, %v1438_v26, %v3408_v10  ;;  %v243_v31 = vld [vmem:[%s2491_s20 + $0xe8] sm:$0xff]  ;;  %v1991_v26 = vld [vmem:[%s3478_s18 + $0x10] sm:$0xff] }
 0x195   : > { %1239 = vrot.lane.b32.xlu1 %v513_v0, %s2435_s11  ;;  %v1601_v47 = vsel %vm1585_vm10, %v1568_v8, %v1226_v11  ;;  %v1989_v11 = vld [vmem:[%s3478_s18] sm:$0xff] }
 0x196   : > { %850 = vrot.lane.b32.xlu0 %v3400_v32, %s2431_s23 }
 0x197   : > { %v1320_v37 = vpop.permute.xlu1 %1319 }
 0x198   : > { %v3442_v1 = vpop.permute.xlu0 %936  ;;  %v1633_v30 = vsel %vm1618_vm11, %v1600_v50, %v1320_v37 }
 0x199   : > { %950 = vrot.lane.b32.xlu1 %v513_v0, %s2432_s24  ;;  %2334 = vmatprep.mubr.msk.f32.mxu0 %vm1663_vm12, %v1633_v30 }
 0x19a   : > { %1241 = vrot.lane.b32.xlu0 %v515_v56, %s2435_s11 }
 0x19b   : > { %v1036_v28 = vpop.permute.xlu1 %1035 }
 0x19c   : > { %v1322_v16 = vpop.permute.xlu0 %1321  ;;  %v1536_v38 = vsel %vm1519_vm8, %v1503_v27, %v1036_v28  ;;  %v1504_v28 = vsel %vm1486_vm7, %v1471_v4, %v3442_v1  ;;  %v693_v1 = vrot.slane %v3481_v41, 2  ;;  %v4011_v27 = vld [vmem:[#allocation18_spill] sm:$0xff] }
 0x19d   : > { %v1634_v3 = vsel %vm1618_vm11, %v1601_v47, %v1322_v16  ;;  %1335 = vrot.lane.b32.xlu1 %v690_v2, %s2436_s12  ;;  %v519_v47 = vrot.slane %v410_v43, 1 }
 0x19e   : > { %578 = vrot.lane.b32.xlu0 %v513_v0, %s2429_s21  ;;  %2335 = vmatmul.mubr.msk.f32.gmra.mrb[14].mxu0 %vm1663_vm12, %v1634_v3 }
 0x19f   : > { %v3458_v55 = vpop.permute.xlu1 %739  ;;  %v520_v25 = vsel %vm445_vm1, %v517_v13, %v519_v47 }
 0x1a0   : > { %v1038_v60 = vpop.permute.xlu0 %1037 }
 0x1a1   : > { %952 = vrot.lane.b32.xlu1 %v515_v56, %s2432_s24  ;;  %v1537_v3 = vsel %vm1519_vm8, %v1504_v28, %v1038_v60 }
 0x1a2   : > { %1051 = vrot.lane.b32.xlu0 %v690_v2, %s2433_s25 }
 0x1a3   : > { %v1132_v6 = vpop.permute.xlu1 %1131 }
 0x1a4   : > { %v3463_v5 = vpop.permute.xlu0 %741  ;;  %v1569_v15 = vsel %vm1552_vm9, %v1536_v38, %v1132_v6  ;;  %v694_v6 = vrot.slane %v3491_v7, 2 }
 0x1a5   : > { %1337 = vrot.lane.b32.xlu1 %v692_v29, %s2436_s12 }
 0x1a6   : > { %580 = vrot.lane.b32.xlu0 %v515_v56, %s2429_s21  ;;  %v697_v23 = vsel %vm622_vm2, %v694_v6, %v696_v24 }
 0x1a7   : > { %v3469_v51 = vpop.permute.xlu1 %836 }
 0x1a8   : > { %v1134_v14 = vpop.permute.xlu0 %1133 }
 0x1a9   : > { %755 = vrot.lane.b32.xlu1 %v690_v2, %s2430_s22  ;;  %v1570_v10 = vsel %vm1552_vm9, %v1537_v3, %v1134_v14  ;;  %v695_v14 = vsel %vm622_vm2, %v693_v1, %v694_v6 }
 0x1aa   : > { %1053 = vrot.lane.b32.xlu0 %v692_v29, %s2433_s25 }
 0x1ab   : > { %v1228_v39 = vpop.permute.xlu1 %1227 }
 0x1ac   : > { %v3483_v36 = vpop.permute.xlu0 %838  ;;  %v1602_v30 = vsel %vm1585_vm10, %v1569_v15, %v1228_v39 }
 0x1ad   : > { %v2315_v44 = vpop.f32.mrb[0].mxu0  ;;  %1147 = vrot.lane.b32.xlu1 %v3481_v41, %s2434_s8 }
 0x1ae   : > { %757 = vrot.lane.b32.xlu0 %v692_v29, %s2430_s22  ;;  %v1836_v0 = vadd.f32 %v2315_v44, %v3488_v42  ;;  %v1830_v34 = vpop.f32.mrb[1].mxu0 }
 0x1af   : > { %v1831_v33 = vadd.f32 %v3488_v42, %v1830_v34  ;;  %v3509_v45 = vpop.permute.xlu1 %938 }
 0x1b0   : > { %v1230_v56 = vpop.permute.xlu0 %1229  ;;  %v2022_v9 = vsub.f32 %v1836_v0, %v1990_v54 }
 0x1b1   : > { %v2021_v50 = vsub.f32 %v1831_v33, %v1989_v11  ;;  %852 = vrot.lane.b32.xlu1 %v3481_v41, %s2431_s23  ;;  %v1603_v19 = vsel %vm1585_vm10, %v1570_v10, %v1230_v56  ;;  %v242_v11 = vld [vmem:[%s2491_s20 + $0xe0] sm:$0xff]  ;;  %v325_v56 = vrot.slane %v243_v31, 7 }
 0x1b2   : > { %1149 = vrot.lane.b32.xlu0 %v3491_v7, %s2434_s8  ;;  %v2054_v37 = vmul.f32 %v2022_v9, %v2022_v9  ;;  %v324_v13 = vrot.slane %v242_v11, 7  ;;  %v1406_v9 = vsel %vm1387_vm4, %v2692_v22, %v4011_v27 }
 0x1b3   : > { %v2053_v61 = vmul.f32 %v2021_v50, %v2021_v50  ;;  %v1324_v8 = vpop.permute.xlu1 %1323  ;;  %v1439_v63 = vsel %vm1420_vm5, %v1406_v9, %v3458_v55  ;;  %v411_v6 = vsel %vm279_vm0, %v325_v56, 0.0 }
 0x1b4   : > { %v3529_v2 = vpop.permute.xlu0 %940  ;;  %v2086_v40 = vsel %vm1387_vm4, %v2054_v37, 0.0  ;;  %v1635_v16 = vsel %vm1618_vm11, %v1602_v30, %v1324_v8  ;;  %v3583_v15 = vsel %vm279_vm0, 0.0, %v324_v13  ;;  %v1472_v37 = vsel %vm1453_vm6, %v1439_v63, %v3469_v51 }
 0x1b5   : > { %v2085_v57 = vsel %vm1387_vm4, %v2053_v61, 0.0  ;;  %1243 = vrot.lane.b32.xlu1 %v518_v52, %s2435_s11  ;;  %2337 = vmatprep.mubr.msk.f32.mxu1 %vm1663_vm12, %v1635_v16  ;;  %v3591_v30 = vsel %vm279_vm0, %v324_v13, %v325_v56  ;;  %v1505_v55 = vsel %vm1486_vm7, %v1472_v37, %v3509_v45  ;;  %v521_v28 = vrot.slane %v3583_v15, 1 }
 0x1b6   : > { %v3540_v29 = vadd.f32 %v2086_v40, %v2085_v57  ;;  %854 = vrot.lane.b32.xlu0 %v3491_v7, %s2431_s23  ;;  %v522_v40 = vrot.slane %v3591_v30, 1  ;;  %v524_v11 = vrot.slane %v411_v6, 1  ;;  %v701_v63 = vrot.slane %v411_v6, 2  ;;  %v4013_v6 = vld [vmem:[#allocation20_spill] sm:$0xff] }
 0x1b7   : > { %v1040_v60 = vpop.permute.xlu1 %1039 }
 0x1b8   : > { %v1326_v18 = vpop.permute.xlu0 %1325  ;;  %v1538_v8 = vsel %vm1519_vm8, %v1505_v55, %v1040_v60  ;;  %v245_v55 = vld [vmem:[%s2491_s20 + $0xf8] sm:$0xff] }
 0x1b9   : > { %v1636_v17 = vsel %vm1618_vm11, %v1603_v19, %v1326_v18  ;;  %954 = vrot.lane.b32.xlu1 %v518_v52, %s2432_s24  ;;  %v4012_v19 = vld [vmem:[#allocation19_spill] sm:$0xff] }
 0x1ba   : > { %2338 = vmatmul.mubr.msk.f32.vlgmr.msra.gmra.mrb[0].mxu1 %vm1663_vm12, %v1636_v17  ;;  %1245 = vrot.lane.b32.xlu0 %v520_v25, %s2435_s11  ;;  %v1407_v60 = vsel %vm1387_vm4, %v2689_v21, %v4012_v19  ;;  %v1408_v19 = vsel %vm1387_vm4, %v2714_v49, %v4013_v6 }
 0x1bb   : > { %v3553_v39 = vpop.permute.xlu1 %743 }
 0x1bc   : > { %v3555_v12 = vpop.permute.xlu0 %1041 }
 0x1bd   : > { %1339 = vrot.lane.b32.xlu1 %v695_v14, %s2436_s12 }
 0x1be   : > { %582 = vrot.lane.b32.xlu0 %v518_v52, %s2429_s21 }
 0x1bf   : > { %v1136_v44 = vpop.permute.xlu1 %1135 }
 0x1c0   : > { %v3559_v54 = vpop.permute.xlu0 %745  ;;  %v1571_v51 = vsel %vm1552_vm9, %v1538_v8, %v1136_v44  ;;  %v1994_v8 = vld [vmem:[%s3478_s18 + $0x28] sm:$0xff] }
 0x1c1   : > { %956 = vrot.lane.b32.xlu1 %v520_v25, %s2432_s24 }
 0x1c2   : > { %1055 = vrot.lane.b32.xlu0 %v695_v14, %s2433_s25 }
 0x1c3   : > { %v3564_v0 = vpop.permute.xlu1 %840 }
 0x1c4   : > { %v1138_v34 = vpop.permute.xlu0 %1137 }
 0x1c5   : > { %1341 = vrot.lane.b32.xlu1 %v697_v23, %s2436_s12 }
 0x1c6   : > { %584 = vrot.lane.b32.xlu0 %v520_v25, %s2429_s21  ;;  %v1440_v25 = vsel %vm1420_vm5, %v1407_v60, %v3463_v5 }
 0x1c7   : > { %v1232_v58 = vpop.permute.xlu1 %1231  ;;  %v1473_v21 = vsel %vm1453_vm6, %v1440_v25, %v3483_v36  ;;  %v698_v36 = vrot.slane %v3583_v15, 2 }
 0x1c8   : > { %v3570_v33 = vpop.permute.xlu0 %842  ;;  %v1604_v16 = vsel %vm1585_vm10, %v1571_v51, %v1232_v58  ;;  %v1506_v31 = vsel %vm1486_vm7, %v1473_v21, %v3529_v2  ;;  %v699_v58 = vrot.slane %v3591_v30, 2  ;;  %v525_v2 = vsel %vm445_vm1, %v522_v40, %v524_v11 }
 0x1c9   : > { %v2318_v43 = vpop.f32.mrb[2].mxu0  ;;  %759 = vrot.lane.b32.xlu1 %v695_v14, %s2430_s22  ;;  %v523_v14 = vsel %vm445_vm1, %v521_v28, %v522_v40  ;;  %v1993_v28 = vld [vmem:[%s3478_s18 + $0x20] sm:$0xff] }
 0x1ca   : > { %v1846_v38 = vadd.f32 %v2318_v43, %v3488_v42  ;;  %v1840_v50 = vpop.f32.mrb[3].mxu0  ;;  %1057 = vrot.lane.b32.xlu0 %v697_v23, %s2433_s25 }
 0x1cb   : > { %v1841_v22 = vadd.f32 %v3488_v42, %v1840_v50  ;;  %v3588_v52 = vpop.permute.xlu1 %942 }
 0x1cc   : > { %v1234_v4 = vpop.permute.xlu0 %1233  ;;  %v2024_v61 = vsub.f32 %v1846_v38, %v1992_v20 }
 0x1cd   : > { %v2023_v47 = vsub.f32 %v1841_v22, %v1991_v26  ;;  %1151 = vrot.lane.b32.xlu1 %v3583_v15, %s2434_s8  ;;  %v702_v26 = vsel %vm622_vm2, %v699_v58, %v701_v63  ;;  %v4014_v63 = vld [vmem:[#allocation21_spill] sm:$0xff] }
 0x1ce   : > { %761 = vrot.lane.b32.xlu0 %v697_v23, %s2430_s22  ;;  %v2056_v3 = vmul.f32 %v2024_v61, %v2024_v61 }
 0x1cf   : > { %v2055_v57 = vmul.f32 %v2023_v47, %v2023_v47  ;;  %v1328_v45 = vpop.permute.xlu1 %1327 }
 0x1d0   : > { %v3603_v10 = vpop.permute.xlu0 %570  ;;  %v1637_v1 = vsel %vm1618_vm11, %v1604_v16, %v1328_v45  ;;  %v2090_v24 = vsel %vm1387_vm4, %v2056_v3, 0.0  ;;  %v328_v45 = vrot.slane %v245_v55, 7 }
 0x1d1   : > { %v2088_v18 = vsel %vm1387_vm4, %v2055_v57, 0.0  ;;  %856 = vrot.lane.b32.xlu1 %v3583_v15, %s2431_s23  ;;  %2340 = vmatprep.mubr.msk.f32.mxu1 %vm1663_vm12, %v1637_v1 }
 0x1d2   : > { %v2089_v17 = vadd.f32 %v2088_v18, %v3540_v29  ;;  %1153 = vrot.lane.b32.xlu0 %v3591_v30, %s2434_s8  ;;  %v1539_v29 = vsel %vm1519_vm8, %v1506_v31, %v3555_v12  ;;  %v1441_v18 = vsel %vm1420_vm5, %v1408_v19, %v3553_v39 }
 0x1d3   : > { %v3623_v44 = vpop.permute.xlu1 %944  ;;  %v1572_v13 = vsel %vm1552_vm9, %v1539_v29, %v1138_v34  ;;  %v700_v34 = vsel %vm622_vm2, %v698_v36, %v699_v58 }
 0x1d4   : > { %v1044_v23 = vpop.permute.xlu0 %1043  ;;  %v2091_v5 = vadd.f32 %v2090_v24, %v2089_v17  ;;  %v1605_v56 = vsel %vm1585_vm10, %v1572_v13, %v1234_v4  ;;  %v244_v4 = vld [vmem:[%s2491_s20 + $0xf0] sm:$0xff]  ;;  %v1474_v17 = vsel %vm1453_vm6, %v1441_v18, %v3564_v0 }
 0x1d5   : > { %1247 = vrot.lane.b32.xlu1 %v523_v14, %s2435_s11  ;;  %v327_v40 = vrot.slane %v244_v4, 7  ;;  %v1507_v31 = vsel %vm1486_vm7, %v1474_v17, %v3588_v52 }
 0x1d6   : > { %858 = vrot.lane.b32.xlu0 %v3591_v30, %s2431_s23  ;;  %v1540_v29 = vsel %vm1519_vm8, %v1507_v31, %v1044_v23  ;;  %v412_v23 = vsel %vm279_vm0, %v328_v45, 0.0 }
 0x1d7   : > { %v1330_v27 = vpop.permute.xlu1 %1329  ;;  %v395_v25 = vsel %vm279_vm0, 0.0, %v327_v40  ;;  %v329_v49 = vsel %vm279_vm0, %v327_v40, %v328_v45 }
 0x1d8   : > { %v3636_v9 = vpop.permute.xlu0 %572  ;;  %v1638_v12 = vsel %vm1618_vm11, %v1605_v56, %v1330_v27  ;;  %v897_v0 = vrot.slane %v395_v25, 1  ;;  %v898_v58 = vrot.slane %v329_v49, 1 }
 0x1d9   : > { %958 = vrot.lane.b32.xlu1 %v523_v14, %s2432_s24  ;;  %2341 = vmatmul.mubr.msk.f32.gmra.mrb[2].mxu1 %vm1663_vm12, %v1638_v12 }
 0x1da   : > { %1249 = vrot.lane.b32.xlu0 %v525_v2, %s2435_s11 }
 0x1db   : > { %v3644_v43 = vpop.permute.xlu1 %747 }
 0x1dc   : > { %v3646_v20 = vpop.permute.xlu0 %1045 }
 0x1dd   : > { %1343 = vrot.lane.b32.xlu1 %v700_v34, %s2436_s12 }
 0x1de   : > { %586 = vrot.lane.b32.xlu0 %v523_v14, %s2429_s21 }
 0x1df   : > { %v1140_v38 = vpop.permute.xlu1 %1139 }
 0x1e0   : > { %v3650_v50 = vpop.permute.xlu0 %749  ;;  %v1573_v13 = vsel %vm1552_vm9, %v1540_v29, %v1140_v38 }
 0x1e1   : > { %960 = vrot.lane.b32.xlu1 %v525_v2, %s2432_s24 }
 0x1e2   : > { %1059 = vrot.lane.b32.xlu0 %v700_v34, %s2433_s25 }
 0x1e3   : > { %v3655_v37 = vpop.permute.xlu1 %844 }
 0x1e4   : > { %v1142_v22 = vpop.permute.xlu0 %1141 }
 0x1e5   : > { %v2321_v61 = vpop.f32.mrb[4].mxu0  ;;  %1345 = vrot.lane.b32.xlu1 %v702_v26, %s2436_s12 }
 0x1e6   : > { %v1856_v47 = vadd.f32 %v2321_v61, %v3488_v42  ;;  %v1850_v51 = vpop.f32.mrb[5].mxu0  ;;  %588 = vrot.lane.b32.xlu0 %v525_v2, %s2429_s21 }
 0x1e7   : > { %v1851_v16 = vadd.f32 %v3488_v42, %v1850_v51  ;;  %v1236_v3 = vpop.permute.xlu1 %1235  ;;  %v998_v51 = vrot.slane %v395_v25, 2 }
 0x1e8   : > { %v3665_v57 = vpop.permute.xlu0 %846  ;;  %v2026_v1 = vsub.f32 %v1856_v47, %v1994_v8  ;;  %v1606_v27 = vsel %vm1585_vm10, %v1573_v13, %v1236_v3  ;;  %v900_v8 = vrot.slane %v412_v23, 1 }
 0x1e9   : > { %v2025_v60 = vsub.f32 %v1851_v16, %v1993_v28  ;;  %763 = vrot.lane.b32.xlu1 %v700_v34, %s2430_s22  ;;  %v999_v28 = vrot.slane %v329_v49, 2 }
 0x1ea   : > { %1061 = vrot.lane.b32.xlu0 %v702_v26, %s2433_s25  ;;  %v2058_v14 = vmul.f32 %v2026_v1, %v2026_v1  ;;  %v901_v3 = vsel %vm445_vm1, %v898_v58, %v900_v8  ;;  %v1001_v1 = vrot.slane %v412_v23, 2 }
 0x1eb   : > { %v2057_v21 = vmul.f32 %v2025_v60, %v2025_v60  ;;  %v3677_v24 = vpop.permute.xlu1 %946 }
 0x1ec   : > { %v1238_v11 = vpop.permute.xlu0 %1237  ;;  %v2094_v56 = vsel %vm1387_vm4, %v2058_v14, 0.0  ;;  %v1002_v60 = vsel %vm622_vm2, %v999_v28, %v1001_v1 }
 0x1ed   : > { %v2092_v39 = vsel %vm1387_vm4, %v2057_v21, 0.0  ;;  %1155 = vrot.lane.b32.xlu1 %v395_v25, %s2434_s8  ;;  %v1995_v21 = vld [vmem:[%s3478_s18 + $0x30] sm:$0xff] }
 0x1ee   : > { %v2093_v36 = vadd.f32 %v2092_v39, %v2091_v5  ;;  %765 = vrot.lane.b32.xlu0 %v702_v26, %s2430_s22  ;;  %v1409_v5 = vsel %vm1387_vm4, %v2711_v48, %v4014_v63  ;;  %v899_v26 = vsel %vm445_vm1, %v897_v0, %v898_v58  ;;  %v4017_v63 = vld [vmem:[#allocation4_spill] sm:$0xff] }
 0x1ef   : > { %v1332_v2 = vpop.permute.xlu1 %1331  ;;  %v1442_v38 = vsel %vm1420_vm5, %v1409_v5, %v3559_v54 }
 0x1f0   : > { %v3689_v12 = vpop.permute.xlu0 %574  ;;  %v1639_v52 = vsel %vm1618_vm11, %v1606_v27, %v1332_v2  ;;  %v2095_v34 = vadd.f32 %v2094_v56, %v2093_v36  ;;  %v1475_v4 = vsel %vm1453_vm6, %v1442_v38, %v3570_v33 }
 0x1f1   : > { %860 = vrot.lane.b32.xlu1 %v395_v25, %s2431_s23  ;;  %2343 = vmatprep.mubr.msk.f32.mxu1 %vm1663_vm12, %v1639_v52  ;;  %v1508_v48 = vsel %vm1486_vm7, %v1475_v4, %v3623_v44  ;;  %v1996_v25 = vld [vmem:[%s3478_s18 + $0x38] sm:$0xff]  ;;  %v1410_v52 = vsel %vm1387_vm4, %v3237_v53, %v3603_v10 }
 0x1f2   : > { %1157 = vrot.lane.b32.xlu0 %v329_v49, %s2434_s8  ;;  %v1541_v47 = vsel %vm1519_vm8, %v1508_v48, %v3646_v20  ;;  %v1000_v20 = vsel %vm622_vm2, %v998_v51, %v999_v28  ;;  %v1443_v5 = vsel %vm1420_vm5, %v1410_v52, %v3644_v43 }
 0x1f3   : > { %v3704_v55 = vpop.permute.xlu1 %948  ;;  %v1574_v54 = vsel %vm1552_vm9, %v1541_v47, %v1142_v22  ;;  %v1476_v4 = vsel %vm1453_vm6, %v1443_v5, %v3655_v37  ;;  %v1411_v37 = vsel %vm1387_vm4, %v3242_v35, %v3636_v9  ;;  %v1412_v5 = vsel %vm1387_vm4, %v3316_v62, %v3689_v12 }
 0x1f4   : > { %v1048_v61 = vpop.permute.xlu0 %1047  ;;  %v1607_v33 = vsel %vm1585_vm10, %v1574_v54, %v1238_v11  ;;  %v4015_v11 = vld [vmem:[#allocation3_spill] sm:$0xff]  ;;  %v1509_v53 = vsel %vm1486_vm7, %v1476_v4, %v3677_v24  ;;  %v1444_v24 = vsel %vm1420_vm5, %v1411_v37, %v3650_v50 }
 0x1f5   : > { %1251 = vrot.lane.b32.xlu1 %v899_v26, %s2435_s11  ;;  %v1542_v54 = vsel %vm1519_vm8, %v1509_v53, %v1048_v61  ;;  %v1477_v61 = vsel %vm1453_vm6, %v1444_v24, %v3665_v57 }
 0x1f6   : > { %862 = vrot.lane.b32.xlu0 %v329_v49, %s2431_s23  ;;  %v4016_v49 = vld [vmem:[#allocation2_spill] sm:$0xff]  ;;  %s213_s23 = scalar_lea.vmem %s3971_s4, %s4020_s16 }
 0x1f7   : > { %v1334_v40 = vpop.permute.xlu1 %1333  ;;  %v2404_v31 = vpack.i.bf16 %v4016_v49, %v4015_v11 }
 0x1f8   : > { %v3714_v16 = vpop.permute.xlu0 %576  ;;  %v1640_v44 = vsel %vm1618_vm11, %v1607_v33, %v1334_v40 }
 0x1f9   : > { %962 = vrot.lane.b32.xlu1 %v899_v26, %s2432_s24  ;;  %2344 = vmatmul.mubr.msk.f32.gmra.mrb[4].mxu1 %vm1663_vm12, %v1640_v44  ;;  %v4018_v26 = vld [vmem:[#allocation8_spill] sm:$0xff]  ;;  %v1510_v44 = vsel %vm1486_vm7, %v1477_v61, %v3704_v55  ;;  %v1413_v12 = vsel %vm1387_vm4, %v3321_v46, %v3714_v16 }
 0x1fa   : > { %1253 = vrot.lane.b32.xlu0 %v901_v3, %s2435_s11 }
 0x1fb   : > { %v3722_v22 = vpop.permute.xlu1 %751 }
 0x1fc   : > { %v1050_v45 = vpop.permute.xlu0 %1049 }
 0x1fd   : > { %1347 = vrot.lane.b32.xlu1 %v1000_v20, %s2436_s12 }
 0x1fe   : > { %964 = vrot.lane.b32.xlu0 %v901_v3, %s2432_s24 }
 0x1ff   : > { %v1144_v6 = vpop.permute.xlu1 %1143 }
 0x200   : > { %v3726_v19 = vpop.permute.xlu0 %753  ;;  %v1575_v51 = vsel %vm1552_vm9, %v1542_v54, %v1144_v6 }
 0x201   : > { %v2324_v18 = vpop.f32.mrb[6].mxu0  ;;  %1063 = vrot.lane.b32.xlu1 %v1000_v20, %s2433_s25  ;;  %v1543_v20 = vsel %vm1519_vm8, %v1510_v44, %v1050_v45  ;;  %v1997_v45 = vld [vmem:[%s3478_s18 + $0x40] sm:$0xff]  ;;  %v2000_v44 = vld [vmem:[%s3478_s18 + $0x58] sm:$0xff] }
 0x202   : > { %v1866_v17 = vadd.f32 %v2324_v18, %v3488_v42  ;;  %v1860_v14 = vpop.f32.mrb[7].mxu0  ;;  %1349 = vrot.lane.b32.xlu0 %v1002_v60, %s2436_s12 }
 0x203   : > { %v1861_v29 = vadd.f32 %v3488_v42, %v1860_v14  ;;  %v3737_v39 = vpop.permute.xlu1 %848 }
 0x204   : > { %v1146_v13 = vpop.permute.xlu0 %1145  ;;  %v2028_v36 = vsub.f32 %v1866_v17, %v1996_v25  ;;  %v1998_v25 = vld [vmem:[%s3478_s18 + $0x48] sm:$0xff] }
 0x205   : > { %v2027_v0 = vsub.f32 %v1861_v29, %v1995_v21  ;;  %1065 = vrot.lane.b32.xlu1 %v1002_v60, %s2433_s25  ;;  %v1576_v1 = vsel %vm1552_vm9, %v1543_v20, %v1146_v13 }
 0x206   : > { %2405 = vrot.lane.b32.xlu0 %v2404_v31, %s2434_s8  ;;  %v2060_v58 = vmul.f32 %v2028_v36, %v2028_v36 }
 0x207   : > { %v2059_v56 = vmul.f32 %v2027_v0, %v2027_v0  ;;  %v1240_v27 = vpop.permute.xlu1 %1239 }
 0x208   : > { %v3741_v2 = vpop.permute.xlu0 %850  ;;  %v2098_v8 = vsel %vm1387_vm4, %v2060_v58, 0.0  ;;  %v1608_v43 = vsel %vm1585_vm10, %v1575_v51, %v1240_v27 }
 0x209   : > { %v2096_v23 = vsel %vm1387_vm4, %v2059_v56, 0.0  ;;  %2410 = vrot.lane.b32.xlu1 %v4017_v63, %s2435_s11 }
 0x20a   : > { %v2097_v38 = vadd.f32 %v2096_v23, %v2095_v34  ;;  %2415 = vrot.lane.b32.xlu0 %v4018_v26, %s2436_s12 }
 0x20b   : > { %v951_v48 = vpop.permute.xlu1 %950 }
 0x20c   : > { %v1242_v47 = vpop.permute.xlu0 %1241  ;;  %v2099_v10 = vadd.f32 %v2098_v8, %v2097_v38  ;;  %v1445_v38 = vsel %vm1420_vm5, %v1412_v5, %v3722_v22  ;;  %v1446_v22 = vsel %vm1420_vm5, %v1413_v12, %v3726_v19  ;;  %v2002_v12 = vld [vmem:[%s3478_s18 + $0x68] sm:$0xff] }
 0x20d   : > { %v1609_v35 = vsel %vm1585_vm10, %v1576_v1, %v1242_v47  ;;  %v1478_v26 = vsel %vm1453_vm6, %v1445_v38, %v3737_v39  ;;  %v1479_v39 = vsel %vm1453_vm6, %v1446_v22, %v3741_v2 }
 0x20e   : > { %v1511_v8 = vsel %vm1486_vm7, %v1478_v26, %v951_v48 }
 0x20f   : > { %v1336_v34 = vpop.permute.xlu1 %1335 }
 0x210   : > { %v3761_v28 = vpop.permute.xlu0 %578  ;;  %v1641_v33 = vsel %vm1618_vm11, %v1608_v43, %v1336_v34 }
 0x211   : > { %2346 = vmatprep.mubr.msk.f32.mxu1 %vm1663_vm12, %v1641_v33 }
 0x213   : > { %v953_v40 = vpop.permute.xlu1 %952 }
 0x214   : > { %v1052_v3 = vpop.permute.xlu0 %1051  ;;  %v1512_v34 = vsel %vm1486_vm7, %v1479_v39, %v953_v40  ;;  %v1999_v40 = vld [vmem:[%s3478_s18 + $0x50] sm:$0xff]  ;;  %v2001_v39 = vld [vmem:[%s3478_s18 + $0x60] sm:$0xff] }
 0x215   : > { %v1544_v53 = vsel %vm1519_vm8, %v1511_v8, %v1052_v3 }
 0x217   : > { %v1338_v9 = vpop.permute.xlu1 %1337 }
 0x218   : > { %v3777_v6 = vpop.permute.xlu0 %580  ;;  %v1642_v50 = vsel %vm1618_vm11, %v1609_v35, %v1338_v9 }
 0x219   : > { %2347 = vmatmul.mubr.msk.f32.gmra.mrb[6].mxu1 %vm1663_vm12, %v1642_v50 }
 0x21b   : > { %v3781_v57 = vpop.permute.xlu1 %755 }
 0x21c   : > { %v1054_v60 = vpop.permute.xlu0 %1053 }
 0x21d   : > { %v2327_v18 = vpop.f32.mrb[8].mxu0  ;;  %v1545_v37 = vsel %vm1519_vm8, %v1512_v34, %v1054_v60 }
 0x21e   : > { %v1876_v55 = vadd.f32 %v2327_v18, %v3488_v42  ;;  %v1870_v17 = vpop.f32.mrb[9].mxu0 }
 0x21f   : > { %v1871_v14 = vadd.f32 %v3488_v42, %v1870_v17  ;;  %v1148_v21 = vpop.permute.xlu1 %1147 }
 0x220   : > { %v3787_v11 = vpop.permute.xlu0 %757  ;;  %v2030_v49 = vsub.f32 %v1876_v55, %v1998_v25 }
 0x221   : > { %v2029_v31 = vsub.f32 %v1871_v14, %v1997_v45 }
 0x222   : > { %v2062_v29 = vmul.f32 %v2030_v49, %v2030_v49 }
 0x223   : > { %v2061_v13 = vmul.f32 %v2029_v31, %v2029_v31  ;;  %v853_v36 = vpop.permute.xlu1 %852 }
 0x224   : > { %v1150_v0 = vpop.permute.xlu0 %1149  ;;  %v2102_v27 = vsel %vm1387_vm4, %v2062_v29, 0.0 }
 0x225   : > { %v2100_v58 = vsel %vm1387_vm4, %v2061_v13, 0.0  ;;  %v1578_v24 = vsel %vm1552_vm9, %v1545_v37, %v1150_v0 }
 0x226   : > { %v2101_v56 = vadd.f32 %v2100_v58, %v2099_v10  ;;  %v1577_v10 = vsel %vm1552_vm9, %v1544_v53, %v1148_v21  ;;  %v1414_v58 = vsel %vm1387_vm4, %v3395_v59, %v3761_v28 }
 0x227   : > { %v1244_v52 = vpop.permute.xlu1 %1243 }
 0x228   : > { %v3791_v23 = vpop.permute.xlu0 %854  ;;  %v2103_v63 = vadd.f32 %v2102_v27, %v2101_v56  ;;  %v1610_v54 = vsel %vm1585_vm10, %v1577_v10, %v1244_v52  ;;  %v1447_v56 = vsel %vm1420_vm5, %v1414_v58, %v3781_v57  ;;  %v1415_v57 = vsel %vm1387_vm4, %v3400_v32, %v3777_v6 }
 0x229   : > { %v1480_v27 = vsel %vm1453_vm6, %v1447_v56, %v853_v36  ;;  %v1448_v36 = vsel %vm1420_vm5, %v1415_v57, %v3787_v11 }
 0x22b   : > { %v955_v4 = vpop.permute.xlu1 %954 }
 0x22c   : > { %v1246_v47 = vpop.permute.xlu0 %1245  ;;  %v1513_v5 = vsel %vm1486_vm7, %v1480_v27, %v955_v4  ;;  %v1481_v4 = vsel %vm1453_vm6, %v1448_v36, %v3791_v23 }
 0x22d   : > { %v1611_v61 = vsel %vm1585_vm10, %v1578_v24, %v1246_v47 }
 0x22f   : > { %v1340_v51 = vpop.permute.xlu1 %1339 }
 0x230   : > { %v1643_v43 = vsel %vm1618_vm11, %v1610_v54, %v1340_v51  ;;  %v3805_v62 = vpop.permute.xlu0 %582 }
 0x231   : > { %2349 = vmatprep.mubr.msk.f32.mxu1 %vm1663_vm12, %v1643_v43 }
 0x233   : > { %v957_v48 = vpop.permute.xlu1 %956 }
 0x234   : > { %v1056_v33 = vpop.permute.xlu0 %1055  ;;  %v1514_v10 = vsel %vm1486_vm7, %v1481_v4, %v957_v48 }
 0x235   : > { %v1546_v38 = vsel %vm1519_vm8, %v1513_v5, %v1056_v33 }
 0x237   : > { %v1342_v46 = vpop.permute.xlu1 %1341 }
 0x238   : > { %v1644_v16 = vsel %vm1618_vm11, %v1611_v61, %v1342_v46  ;;  %v3820_v3 = vpop.permute.xlu0 %584 }
 0x239   : > { %v2330_v19 = vpop.f32.mrb[10].mxu0  ;;  %2350 = vmatmul.mubr.msk.f32.gmra.mrb[8].mxu1 %vm1663_vm12, %v1644_v16  ;;  %v1417_v58 = vsel %vm1387_vm4, %v3491_v7, %v3820_v3 }
 0x23a   : > { %v1886_v2 = vadd.f32 %v2330_v19, %v3488_v42  ;;  %v1880_v20 = vpop.f32.mrb[11].mxu0 }
 0x23b   : > { %v1881_v1 = vadd.f32 %v3488_v42, %v1880_v20  ;;  %v3827_v35 = vpop.permute.xlu1 %759 }
 0x23c   : > { %v2032_v9 = vsub.f32 %v1886_v2, %v2000_v44  ;;  %v1058_v50 = vpop.permute.xlu0 %1057 }
 0x23d   : > { %v2031_v60 = vsub.f32 %v1881_v1, %v1999_v40  ;;  %v1547_v51 = vsel %vm1519_vm8, %v1514_v10, %v1058_v50 }
 0x23e   : > { %v2064_v18 = vmul.f32 %v2032_v9, %v2032_v9 }
 0x23f   : > { %v2063_v25 = vmul.f32 %v2031_v60, %v2031_v60  ;;  %v1152_v55 = vpop.permute.xlu1 %1151 }
 0x240   : > { %v3829_v17 = vpop.permute.xlu0 %761  ;;  %v2106_v21 = vsel %vm1387_vm4, %v2064_v18, 0.0  ;;  %v1579_v26 = vsel %vm1552_vm9, %v1546_v38, %v1152_v55  ;;  %v1416_v55 = vsel %vm1387_vm4, %v3481_v41, %v3805_v62  ;;  %v2004_v38 = vld [vmem:[%s3478_s18 + $0x78] sm:$0xff] }
 0x241   : > { %v2104_v45 = vsel %vm1387_vm4, %v2063_v25, 0.0  ;;  %v1450_v41 = vsel %vm1420_vm5, %v1417_v58, %v3829_v17  ;;  %v2003_v17 = vld [vmem:[%s3478_s18 + $0x70] sm:$0xff] }
 0x242   : > { %v2105_v14 = vadd.f32 %v2104_v45, %v2103_v63  ;;  %v1449_v45 = vsel %vm1420_vm5, %v1416_v55, %v3827_v35  ;;  %v2006_v55 = vld [vmem:[%s3478_s18 + $0x88] sm:$0xff] }
 0x243   : > { %v857_v49 = vpop.permute.xlu1 %856 }
 0x244   : > { %v1154_v31 = vpop.permute.xlu0 %1153  ;;  %v2107_v29 = vadd.f32 %v2106_v21, %v2105_v14  ;;  %v1482_v14 = vsel %vm1453_vm6, %v1449_v45, %v857_v49 }
 0x245   : > { %v1580_v22 = vsel %vm1552_vm9, %v1547_v51, %v1154_v31 }
 0x247   : > { %v1248_v13 = vpop.permute.xlu1 %1247 }
 0x248   : > { %v859_v0 = vpop.permute.xlu0 %858  ;;  %v1612_v8 = vsel %vm1585_vm10, %v1579_v26, %v1248_v13 }
 0x249   : > { %v1483_v49 = vsel %vm1453_vm6, %v1450_v41, %v859_v0 }
 0x24b   : > { %v959_v52 = vpop.permute.xlu1 %958 }
 0x24c   : > { %v1250_v63 = vpop.permute.xlu0 %1249  ;;  %v1515_v31 = vsel %vm1486_vm7, %v1482_v14, %v959_v52 }
 0x24d   : > { %v1613_v34 = vsel %vm1585_vm10, %v1580_v22, %v1250_v63 }
 0x24f   : > { %v1344_v47 = vpop.permute.xlu1 %1343 }
 0x250   : > { %v1645_v59 = vsel %vm1618_vm11, %v1612_v8, %v1344_v47  ;;  %v3844_v28 = vpop.permute.xlu0 %586 }
 0x251   : > { %2352 = vmatprep.mubr.msk.f32.mxu1 %vm1663_vm12, %v1645_v59 }
 0x253   : > { %v961_v53 = vpop.permute.xlu1 %960 }
 0x254   : > { %v1060_v54 = vpop.permute.xlu0 %1059  ;;  %v1516_v5 = vsel %vm1486_vm7, %v1483_v49, %v961_v53 }
 0x255   : > { %v2333_v43 = vpop.f32.mrb[12].mxu0  ;;  %v1548_v13 = vsel %vm1519_vm8, %v1515_v31, %v1060_v54  ;;  %v1418_v54 = vsel %vm1387_vm4, %v3583_v15, %v3844_v28 }
 0x256   : > { %v1896_v32 = vadd.f32 %v2333_v43, %v3488_v42  ;;  %v1890_v6 = vpop.f32.mrb[13].mxu0 }
 0x257   : > { %v1891_v11 = vadd.f32 %v3488_v42, %v1890_v6  ;;  %v1346_v33 = vpop.permute.xlu1 %1345 }
 0x258   : > { %v2034_v23 = vsub.f32 %v1896_v32, %v2002_v12  ;;  %v1646_v37 = vsel %vm1618_vm11, %v1613_v34, %v1346_v33  ;;  %v589_v48 = vpop.permute.xlu0 %588 }
 0x259   : > { %v2033_v24 = vsub.f32 %v1891_v11, %v2001_v39  ;;  %2353 = vmatmul.mubr.msk.f32.gmra.mrb[10].mxu1 %vm1663_vm12, %v1646_v37  ;;  %v1419_v10 = vsel %vm1387_vm4, %v3591_v30, %v589_v48 }
 0x25a   : > { %v2066_v61 = vmul.f32 %v2034_v23, %v2034_v23 }
 0x25b   : > { %v2065_v46 = vmul.f32 %v2033_v24, %v2033_v24  ;;  %v764_v16 = vpop.permute.xlu1 %763 }
 0x25c   : > { %v1062_v19 = vpop.permute.xlu0 %1061  ;;  %v2110_v20 = vsel %vm1387_vm4, %v2066_v61, 0.0  ;;  %v1451_v32 = vsel %vm1420_vm5, %v1418_v54, %v764_v16  ;;  %v2009_v54 = vld [vmem:[%s3478_s18 + $0xa0] sm:$0xff] }
 0x25d   : > { %v2108_v44 = vsel %vm1387_vm4, %v2065_v46, 0.0  ;;  %v1549_v7 = vsel %vm1519_vm8, %v1516_v5, %v1062_v19 }
 0x25e   : > { %v2109_v2 = vadd.f32 %v2108_v44, %v2107_v29 }
 0x25f   : > { %v1156_v40 = vpop.permute.xlu1 %1155 }
 0x260   : > { %v766_v1 = vpop.permute.xlu0 %765  ;;  %v2111_v9 = vadd.f32 %v2110_v20, %v2109_v2  ;;  %v1581_v56 = vsel %vm1552_vm9, %v1548_v13, %v1156_v40 }
 0x261   : > { %v1452_v51 = vsel %vm1420_vm5, %v1419_v10, %v766_v1 }
 0x263   : > { %v861_v50 = vpop.permute.xlu1 %860 }
 0x264   : > { %v1158_v60 = vpop.permute.xlu0 %1157  ;;  %v1484_v23 = vsel %vm1453_vm6, %v1451_v32, %v861_v50 }
 0x265   : > { %v1582_v8 = vsel %vm1552_vm9, %v1549_v7, %v1158_v60 }
 0x267   : > { %v1252_v18 = vpop.permute.xlu1 %1251 }
 0x268   : > { %v863_v25 = vpop.permute.xlu0 %862  ;;  %v1614_v62 = vsel %vm1585_vm10, %v1581_v56, %v1252_v18 }
 0x269   : > { %v1485_v6 = vsel %vm1453_vm6, %v1452_v51, %v863_v25 }
 0x26b   : > { %v963_v21 = vpop.permute.xlu1 %962 }
 0x26c   : > { %v1254_v29 = vpop.permute.xlu0 %1253  ;;  %v1517_v28 = vsel %vm1486_vm7, %v1484_v23, %v963_v21  ;;  %v2005_v21 = vld [vmem:[%s3478_s18 + $0x80] sm:$0xff] }
 0x26d   : > { %v1615_v59 = vsel %vm1585_vm10, %v1582_v8, %v1254_v29 }
 0x26f   : > { %v1348_v35 = vpop.permute.xlu1 %1347 }
 0x270   : > { %v1647_v27 = vsel %vm1618_vm11, %v1614_v62, %v1348_v35  ;;  %v965_v52 = vpop.permute.xlu0 %964 }
 0x271   : > { %v2336_v63 = vpop.f32.mrb[14].mxu0  ;;  %2355 = vmatprep.mubr.msk.f32.mxu1 %vm1663_vm12, %v1647_v27  ;;  %v1518_v34 = vsel %vm1486_vm7, %v1485_v6, %v965_v52  ;;  %v2008_v52 = vld [vmem:[%s3478_s18 + $0x98] sm:$0xff] }
 0x272   : > { %v1906_v3 = vadd.f32 %v2336_v63, %v3488_v42  ;;  %v1900_v26 = vpop.f32.mrb[15].mxu0 }
 0x273   : > { %v1901_v47 = vadd.f32 %v3488_v42, %v1900_v26  ;;  %v1064_v0 = vpop.permute.xlu1 %1063 }
 0x274   : > { %v2036_v57 = vsub.f32 %v1906_v3, %v2004_v38  ;;  %v1350_v36 = vpop.permute.xlu0 %1349  ;;  %v1550_v61 = vsel %vm1519_vm8, %v1517_v28, %v1064_v0  ;;  %v2007_v38 = vld [vmem:[%s3478_s18 + $0x90] sm:$0xff] }
 0x275   : > { %v2035_v4 = vsub.f32 %v1901_v47, %v2003_v17  ;;  %v1648_v53 = vsel %vm1618_vm11, %v1615_v59, %v1350_v36 }
 0x276   : > { %2356 = vmatmul.mubr.msk.f32.gmra.mrb[12].mxu1 %vm1663_vm12, %v1648_v53  ;;  %v2068_v43 = vmul.f32 %v2036_v57, %v2036_v57 }
 0x277   : > { %v2067_v12 = vmul.f32 %v2035_v4, %v2035_v4  ;;  %v1066_v22 = vpop.permute.xlu1 %1065  ;;  %v2010_v4 = vld [vmem:[%s3478_s18 + $0xa8] sm:$0xff] }
 0x278   : > { %v2406_v39 = vpop.permute.xlu0 %2405  ;;  %v1551_v15 = vsel %vm1519_vm8, %v1518_v34, %v1066_v22  ;;  %v2114_v48 = vsel %vm1387_vm4, %v2068_v43, 0.0 }
 0x279   : > { %v2112_v30 = vsel %vm1387_vm4, %v2067_v12, 0.0  ;;  %v2408_v11 = vunpack.i.h.bf16 %v2406_v39  ;;  %v2407_v33 = vunpack.i.l.bf16 %v2406_v39 }
 0x27a   : > { %v2113_v37 = vadd.f32 %v2112_v30, %v2111_v9 }
 0x27b   : > { %v2411_v24 = vpop.permute.xlu1 %2410  ;;  %v1584_v2 = vsel %vm1552_vm9, %v1551_v15, %v2408_v11  ;;  %v1583_v20 = vsel %vm1552_vm9, %v1550_v61, %v2407_v33  ;;  %v2012_v33 = vld [vmem:[%s3478_s18 + $0xb8] sm:$0xff]  ;;  %v2011_v15 = vld [vmem:[%s3478_s18 + $0xb0] sm:$0xff] }
 0x27c   : > { %v2413_v46 = vunpack.i.h.bf16 %v2411_v24  ;;  %v2412_v16 = vunpack.i.l.bf16 %v2411_v24  ;;  %v2416_v19 = vpop.permute.xlu0 %2415  ;;  %v2115_v44 = vadd.f32 %v2114_v48, %v2113_v37 }
 0x27d   : > { %v2418_v40 = vunpack.i.h.bf16 %v2416_v19  ;;  %v2417_v1 = vunpack.i.l.bf16 %v2416_v19 }
 0x27e   : > { %v1616_v9 = vsel %vm1585_vm10, %v1583_v20, %v2412_v16  ;;  %v1617_v50 = vsel %vm1585_vm10, %v1584_v2, %v2413_v46 }
 0x27f   : > { %v1649_v60 = vsel %vm1618_vm11, %v1616_v9, %v2417_v1  ;;  %v1650_v18 = vsel %vm1618_vm11, %v1617_v50, %v2418_v40  ;;  %v2014_v40 = vld [vmem:[%s3478_s18 + $0xc8] sm:$0xff]  ;;  %v2419_v1 = vld [vmem:[%s3970_s3] ss:$0 sm:$0xff] }
 0x280   : > { %2358 = vmatprep.mubr.msk.f32.mxu1 %vm1663_vm12, %v1649_v60  ;;  %v2013_v50 = vld [vmem:[%s3478_s18 + $0xc0] sm:$0xff] }
 0x281   : > { %2359 = vmatmul.mubr.msk.f32.gmra.mrb[14].mxu1 %vm1663_vm12, %v1650_v18 }
 0x28d   : > { %v2339_v25 = vpop.f32.mrb[0].mxu1 }
 0x28e   : > { %v1916_v45 = vadd.f32 %v2339_v25, %v3488_v42  ;;  %v1910_v14 = vpop.f32.mrb[1].mxu1 }
 0x28f   : > { %v1911_v31 = vadd.f32 %v3488_v42, %v1910_v14 }
 0x290   : > { %v2038_v29 = vsub.f32 %v1916_v45, %v2006_v55 }
 0x291   : > { %v2037_v13 = vsub.f32 %v1911_v31, %v2005_v21 }
 0x292   : > { %v2070_v58 = vmul.f32 %v2038_v29, %v2038_v29 }
 0x293   : > { %v2069_v56 = vmul.f32 %v2037_v13, %v2037_v13 }
 0x294   : > { %v2118_v35 = vsel %vm1387_vm4, %v2070_v58, 0.0  ;;  %v2016_v58 = vld [vmem:[%s3478_s18 + $0xd8] sm:$0xff] }
 0x295   : > { %v2116_v41 = vsel %vm1387_vm4, %v2069_v56, 0.0 }
 0x296   : > { %v2117_v62 = vadd.f32 %v2116_v41, %v2115_v44 }
 0x298   : > { %v2119_v49 = vadd.f32 %v2118_v35, %v2117_v62  ;;  %v2015_v62 = vld [vmem:[%s3478_s18 + $0xd0] sm:$0xff] }
 0x2ac   : > { %v2342_v27 = vpop.f32.mrb[2].mxu1 }
 0x2ad   : > { %v1926_v5 = vadd.f32 %v2342_v27, %v3488_v42  ;;  %v1920_v63 = vpop.f32.mrb[3].mxu1 }
 0x2ae   : > { %v1921_v7 = vadd.f32 %v3488_v42, %v1920_v63 }
 0x2af   : > { %v2040_v3 = vsub.f32 %v1926_v5, %v2008_v52 }
 0x2b0   : > { %v2039_v26 = vsub.f32 %v1921_v7, %v2007_v38 }
 0x2b1   : > { %v2072_v17 = vmul.f32 %v2040_v3, %v2040_v3 }
 0x2b2   : > { %v2071_v8 = vmul.f32 %v2039_v26, %v2039_v26 }
 0x2b3   : > { %v2122_v59 = vsel %vm1387_vm4, %v2072_v17, 0.0  ;;  %v2018_v17 = vld [vmem:[%s3478_s18 + $0xe8] sm:$0xff] }
 0x2b4   : > { %v2120_v47 = vsel %vm1387_vm4, %v2071_v8, 0.0 }
 0x2b5   : > { %v2121_v0 = vadd.f32 %v2120_v47, %v2119_v49 }
 0x2b7   : > { %v2123_v57 = vadd.f32 %v2122_v59, %v2121_v0  ;;  %v2017_v0 = vld [vmem:[%s3478_s18 + $0xe0] sm:$0xff] }
 0x2cc   : > { %v2345_v36 = vpop.f32.mrb[4].mxu1 }
 0x2cd   : > { %v1936_v53 = vadd.f32 %v2345_v36, %v3488_v42  ;;  %v1930_v10 = vpop.f32.mrb[5].mxu1 }
 0x2ce   : > { %v1931_v51 = vadd.f32 %v3488_v42, %v1930_v10 }
 0x2cf   : > { %v2042_v43 = vsub.f32 %v1936_v53, %v2010_v4 }
 0x2d0   : > { %v2041_v12 = vsub.f32 %v1931_v51, %v2009_v54 }
 0x2d1   : > { %v2074_v22 = vmul.f32 %v2042_v43, %v2042_v43 }
 0x2d2   : > { %v2073_v32 = vmul.f32 %v2041_v12, %v2041_v12  ;;  %v2020_v12 = vld [vmem:[%s3478_s18 + $0xf8] sm:$0xff] }
 0x2d3   : > { %v2126_v34 = vsel %vm1387_vm4, %v2074_v22, 0.0 }
 0x2d4   : > { %v2124_v6 = vsel %vm1387_vm4, %v2073_v32, 0.0 }
 0x2d5   : > { %v2125_v39 = vadd.f32 %v2124_v6, %v2123_v57 }
 0x2d7   : > { %v2127_v30 = vadd.f32 %v2126_v34, %v2125_v39  ;;  %v2019_v39 = vld [vmem:[%s3478_s18 + $0xf0] sm:$0xff] }
 0x2ec   : > { %v2348_v11 = vpop.f32.mrb[6].mxu1 }
 0x2ed   : > { %v1946_v23 = vadd.f32 %v2348_v11, %v3488_v42  ;;  %v1940_v37 = vpop.f32.mrb[7].mxu1 }
 0x2ee   : > { %v1941_v28 = vadd.f32 %v3488_v42, %v1940_v37 }
 0x2ef   : > { %v2044_v48 = vsub.f32 %v1946_v23, %v2012_v33 }
 0x2f0   : > { %v2043_v24 = vsub.f32 %v1941_v28, %v2011_v15 }
 0x2f1   : > { %v2076_v61 = vmul.f32 %v2044_v48, %v2044_v48 }
 0x2f2   : > { %v2075_v46 = vmul.f32 %v2043_v24, %v2043_v24 }
 0x2f3   : > { %v2130_v44 = vsel %vm1387_vm4, %v2076_v61, 0.0 }
 0x2f4   : > { %v2128_v16 = vsel %vm1387_vm4, %v2075_v46, 0.0 }
 0x2f5   : > { %v2129_v19 = vadd.f32 %v2128_v16, %v2127_v30 }
 0x2f7   : > { %v2131_v2 = vadd.f32 %v2130_v44, %v2129_v19 }
 0x30c   : > { %v2351_v20 = vpop.f32.mrb[8].mxu1 }
 0x30d   : > { %v1956_v9 = vadd.f32 %v2419_v1, %v2351_v20  ;;  %v1950_v42 = vpop.f32.mrb[9].mxu1 }
 0x30e   : > { %v1951_v60 = vadd.f32 %v2419_v1, %v1950_v42 }
 0x30f   : > { %v2046_v18 = vsub.f32 %v1956_v9, %v2014_v40 }
 0x310   : > { %v2045_v25 = vsub.f32 %v1951_v60, %v2013_v50 }
 0x311   : > { %v2078_v55 = vmul.f32 %v2046_v18, %v2046_v18 }
 0x312   : > { %v2077_v45 = vmul.f32 %v2045_v25, %v2045_v25 }
 0x313   : > { %v2134_v31 = vsel %vm1387_vm4, %v2078_v55, 0.0 }
 0x314   : > { %v2132_v14 = vsel %vm1387_vm4, %v2077_v45, 0.0 }
 0x315   : > { %v2133_v21 = vadd.f32 %v2132_v14, %v2131_v2 }
 0x317   : > { %v2135_v29 = vadd.f32 %v2134_v31, %v2133_v21 }
 0x32c   : > { %v2354_v13 = vpop.f32.mrb[10].mxu1 }
 0x32d   : > { %v1966_v56 = vadd.f32 %v2419_v1, %v2354_v13  ;;  %v1960_v41 = vpop.f32.mrb[11].mxu1 }
 0x32e   : > { %v1961_v35 = vadd.f32 %v2419_v1, %v1960_v41 }
 0x32f   : > { %v2048_v49 = vsub.f32 %v1966_v56, %v2016_v58 }
 0x330   : > { %v2047_v27 = vsub.f32 %v1961_v35, %v2015_v62 }
 0x331   : > { %v2080_v52 = vmul.f32 %v2048_v49, %v2048_v49 }
 0x332   : > { %v2079_v5 = vmul.f32 %v2047_v27, %v2047_v27 }
 0x333   : > { %v2138_v7 = vsel %vm1387_vm4, %v2080_v52, 0.0 }
 0x334   : > { %v2136_v63 = vsel %vm1387_vm4, %v2079_v5, 0.0 }
 0x335   : > { %v2137_v38 = vadd.f32 %v2136_v63, %v2135_v29 }
 0x337   : > { %v2139_v3 = vadd.f32 %v2138_v7, %v2137_v38 }
 0x349   : > { %v2357_v26 = vpop.f32.mrb[12].mxu1 }
 0x34a   : > { %v1976_v8 = vadd.f32 %v2419_v1, %v2357_v26  ;;  %v1970_v47 = vpop.f32.mrb[13].mxu1 }
 0x34b   : > { %v1971_v59 = vadd.f32 %v2419_v1, %v1970_v47 }
 0x34c   : > { %v2050_v57 = vsub.f32 %v1976_v8, %v2018_v17 }
 0x34d   : > { %v2049_v36 = vsub.f32 %v1971_v59, %v2017_v0 }
 0x34e   : > { %v2082_v4 = vmul.f32 %v2050_v57, %v2050_v57 }
 0x34f   : > { %v2081_v53 = vmul.f32 %v2049_v36, %v2049_v36 }
 0x350   : > { %v2142_v51 = vsel %vm1387_vm4, %v2082_v4, 0.0 }
 0x351   : > { %v2140_v10 = vsel %vm1387_vm4, %v2081_v53, 0.0 }
 0x352   : > { %v2141_v54 = vadd.f32 %v2140_v10, %v2139_v3 }
 0x354   : > { %v2360_v43 = vpop.f32.mrb[14].mxu1  ;;  %v2143_v22 = vadd.f32 %v2142_v51, %v2141_v54 }
 0x355   : > { %v1986_v32 = vadd.f32 %v2419_v1, %v2360_v43  ;;  %v1980_v6 = vpop.f32.mrb[15].mxu1 }
 0x356   : > { %v1981_v34 = vadd.f32 %v2419_v1, %v1980_v6 }
 0x357   : > { %v2052_v30 = vsub.f32 %v1986_v32, %v2020_v12 }
 0x358   : > { %v2051_v11 = vsub.f32 %v1981_v34, %v2019_v39 }
 0x359   : > { %v2084_v33 = vmul.f32 %v2052_v30, %v2052_v30 }
 0x35a   : > { %v2083_v23 = vmul.f32 %v2051_v11, %v2051_v11 }
 0x35b   : > { %v2146_v28 = vsel %vm1387_vm4, %v2084_v33, 0.0 }
 0x35c   : > { %v2144_v37 = vsel %vm1387_vm4, %v2083_v23, 0.0 }
 0x35d   : > { %v2145_v15 = vadd.f32 %v2144_v37, %v2143_v22 }
 0x35f   : > { %v2147_v48 = vadd.f32 %v2146_v28, %v2145_v15 }
 0x361   : > { %2148 = vadd.xlane.f32.xlu1 %v2147_v48 }
 0x3ee   : > { %v2149_v24 = vpop.xlane.xlu1 %2148 }
 0x3ef   : > { %v2150_v61 = vrot.slane %v2149_v24, 4 }
 0x3f1   : > { %v2151_v46 = vadd.f32 %v2150_v61, %v2149_v24 }
 0x3f3   : > { %v2152_v16 = vrot.slane %v2151_v46, 2 }
 0x3f5   : > { %v2153_v19 = vadd.f32 %v2152_v16, %v2151_v46 }
 0x3f7   : > { %v2154_v44 = vrot.slane %v2153_v19, 1 }
 0x3f9   : > { %v2155_v2 = vadd.f32 %v2154_v44, %v2153_v19 }
 0x3fb   : > { %2375 = vpush %v2155_v2 }
 0x42c   : > { %s2376_s24 = spop %2375 }
 0x42d   : > { %v2157_v20 = vstv %s2376_s24 }
 0x42e   : > { %2159 = vst.msk [vmem:[%s213_s23] sm:$0x1] %vm2158_vm13, %v2157_v20 }
 0x42f PF: > { %s14_s15 = sadd.s32 1, %s2426_s15  }
 0x430   : > { %p11_p4 = scmp.ge.s32.totalorder %s14_s15, 4  }
 0x432   :  { %13 = sbr.rel (!%p11_p4) target bundleno = 1 (0x1), region = 69 }

</bundles_post_ra>
